<compile_context>
chip_gen: v6e
topology: v6e:2x2x1
jax: 0.10.0
libtpu: 0.0.40
codegen_flags: <defaults>
</compile_context>

<pallas_src>
import functools

import jax
import jax.numpy as jnp
from jax import lax
from jax.experimental import pallas as pl
from jax.experimental.pallas import tpu as pltpu


_NP = 8  # scalars packed per (batch, frame, keypoint):
         # [kpd_x, kpd_y, kps_x, kps_y, diff_x, diff_y, not_bg, pad]


def _movement_embedding_kernel(params_ref, coords_ref, qxbase_ref, tile_ref,
                               pybase_ref, lsel_ref, src_ref, out_ref, *,
                               H, W, D, K_total, Cblk, kp_variance,
                               use_heatmap, use_difference, use_deformed,
                               heatmap_type, norm_const):
    """One (batch b, frame t) step: the full (K_total, Cblk, HW) channel block.

    params_ref : SMEM f32[(bs*d*K_total)*_NP]  packed per-(b,t,k) scalars
    coords_ref : VMEM f32[2, HW]               normalized (gx, gy) pixel coords
    qxbase_ref : VMEM f32[W, W]                q - x      (x-tent base)
    tile_ref   : VMEM f32[W, HW]               one-hot[x(j) == q]
    pybase_ref : VMEM f32[Cs*H, HW]            p - y      (y-tent base)
    lsel_ref   : VMEM f32[Cblk, Cs*H]          deformed-row placement / y-sum
    src_ref    : VMEM f32[1, Cs*H, W]          source image (channel-major rows)
    out_ref    : VMEM f32[1, K_total, Cblk, HW]
    """
    b = pl.program_id(0)
    t = pl.program_id(1)
    HW = H * W

    # Grid-invariant tensors (hoisted to the wrapper, resident in VMEM).
    gx = coords_ref[0:1, :]                      # (1, HW)
    gy = coords_ref[1:2, :]                      # (1, HW)
    qxbase = qxbase_ref[...]                     # (W, W)
    tile_m = tile_ref[...]                       # (W, HW)
    pybase = pybase_ref[...]                     # (Cs*H, HW)
    lsel = lsel_ref[...]                         # (Cblk, Cs*H)
    src2 = src_ref[0]                            # (Cs*H, W)

    row_ids = lax.broadcasted_iota(jnp.int32, (Cblk, 1), 0)

    def row_onehot(r):                           # (Cblk, 1) selector for row r
        return (row_ids == r).astype(jnp.float32)

    inv2v = -0.5 / kp_variance

    def gaussian(cx, cy):
        # kp2gaussian (scalar-variance branch) + normalize_heatmap.
        g = jnp.exp(inv2v * ((gx - cx) ** 2 + (gy - cy) ** 2))      # (1, HW)
        if norm_const == 'sum':
            g = g / jnp.sum(g, axis=-1, keepdims=True)
        else:
            g = g * (1.0 / float(norm_const))
        return g

    blocks = []
    for k in range(K_total):                     # static unroll (K_total small)
        off = ((b * D + t) * K_total + k) * _NP
        block = jnp.zeros((Cblk, HW), jnp.float32)
        row = 0

        if use_heatmap:
            hm = gaussian(params_ref[off + 0], params_ref[off + 1])
            if heatmap_type == 'difference':
                hm = hm - gaussian(params_ref[off + 2], params_ref[off + 3])
            hm = hm * params_ref[off + 6]        # bg feature-map row is zeros
            block = block + row_onehot(row) * hm
            row += 1

        dx = params_ref[off + 4]
        dy = params_ref[off + 5]

        if use_difference:
            block = block + row_onehot(row) * dx
            block = block + row_onehot(row + 1) * dy
            row += 2

        if use_deformed:
            # F.grid_sample(source, identity_grid + kp_diff, bilinear,
            # padding_mode='zeros', align_corners=True) is a pure translation
            # by (tx, ty) pixels -> separable tent-weight resampling on the MXU.
            tx = dx * ((W - 1) * 0.5)
            ty = dy * ((H - 1) * 0.5)
            wx = jnp.maximum(0.0, 1.0 - jnp.abs(tx - qxbase))        # (W, W)
            wy = jnp.maximum(0.0, 1.0 - jnp.abs(ty - pybase))        # (Cs*H, HW)
            tpass = jnp.dot(src2, wx, preferred_element_type=jnp.float32)
            tlane = jnp.dot(tpass, tile_m, preferred_element_type=jnp.float32)
            block = block + jnp.dot(lsel, tlane * wy,
                                    preferred_element_type=jnp.float32)

        blocks.append(block)

    # Single assembled store of the whole (K_total, Cblk, HW) block.
    out_ref[0] = jnp.stack(blocks, axis=0)


def movement_embedding_forward(source_image, kp_driving, kp_source, *,
                               num_kp, kp_variance, num_channels,
                               use_deformed_source_image=False,
                               use_difference=False, use_heatmap=True,
                               add_bg_feature_map=False,
                               heatmap_type='gaussian', norm_const='sum',
                               scale_factor=1):
    assert heatmap_type in ('gaussian', 'difference')
    assert int(use_heatmap) + int(use_deformed_source_image) + int(use_difference) >= 1
    assert scale_factor == 1  # TODO(synk): F.interpolate branch not implemented.

    source_image = source_image.astype(jnp.float32)
    bs, C, d_img, h, w = source_image.shape
    assert C == num_channels
    _, d, K, _ = kp_driving['mean'].shape
    K_total = K + int(add_bg_feature_map)
    Cs = C * d_img
    HW = h * w
    Cblk = (int(use_heatmap) + 2 * int(use_difference)
            + Cs * int(use_deformed_source_image))
    # Lane-dense output blocks (one frame per step on the flattened d*HW axis).
    assert HW % 128 == 0, "h*w must be a multiple of 128 for the lane-dense layout"

    # ---- per-(b, t, kp) scalars, packed into one flat SMEM array -------------
    kpd = kp_driving['mean'].astype(jnp.float32)          # (bs, d, K, 2) = (x, y)
    kps = kp_source['mean'].astype(jnp.float32)
    diff = kps - kpd
    not_bg = jnp.ones((bs, d, K, 1), jnp.float32)
    if add_bg_feature_map:
        z2 = jnp.zeros((bs, d, 1, 2), jnp.float32)
        z1 = jnp.zeros((bs, d, 1, 1), jnp.float32)
        kpd = jnp.concatenate([z2, kpd], axis=2)
        kps = jnp.concatenate([z2, kps], axis=2)
        diff = jnp.concatenate([z2, diff], axis=2)
        not_bg = jnp.concatenate([z1, not_bg], axis=2)
    params = jnp.concatenate(
        [kpd, kps, diff, not_bg,
         jnp.zeros((bs, d, K_total, _NP - 7), jnp.float32)], axis=-1)
    params = params.reshape(bs * d * K_total * _NP)

    # ---- grid-invariant index tensors (hoisted out of the kernel) ------------
    xs = jnp.arange(w, dtype=jnp.float32)
    ys = jnp.arange(h, dtype=jnp.float32)
    fx = jnp.tile(xs, h)                          # (HW,) column index of pixel j
    fy = jnp.repeat(ys, w)                        # (HW,) row index of pixel j
    gx = 2.0 * fx / (w - 1) - 1.0
    gy = 2.0 * fy / (h - 1) - 1.0
    coords = jnp.stack([gx, gy], axis=0)          # (2, HW)

    qxbase = xs[:, None] - xs[None, :]            # (W, W)      = q - x
    tile_mat = (xs[:, None] == fx[None, :]).astype(jnp.float32)   # (W, HW)
    p_row = jnp.tile(jnp.arange(h, dtype=jnp.float32), Cs)        # (Cs*H,)
    pybase = p_row[:, None] - fy[None, :]         # (Cs*H, HW)  = p - y

    lsel = jnp.zeros((Cblk, Cs * h), jnp.float32)
    if use_deformed_source_image:
        def_row0 = int(use_heatmap) + 2 * int(use_difference)
        rows = def_row0 + (jnp.arange(Cs * h) // h)
        lsel = (jnp.arange(Cblk)[:, None] == rows[None, :]).astype(jnp.float32)

    # Channel-major source image rows: (bs, Cs*H, W).
    src2 = source_image.reshape(bs, Cs * h, w)

    kern = functools.partial(
        _movement_embedding_kernel, H=h, W=w, D=d, K_total=K_total, Cblk=Cblk,
        kp_variance=kp_variance, use_heatmap=use_heatmap,
        use_difference=use_difference,
        use_deformed=use_deformed_source_image,
        heatmap_type=heatmap_type, norm_const=norm_const)

    out = pl.pallas_call(
        kern,
        out_shape=jax.ShapeDtypeStruct((bs, K_total, Cblk, d * HW), jnp.float32),
        grid=(bs, d),
        in_specs=[
            pl.BlockSpec(memory_space=pltpu.MemorySpace.SMEM),          # params
            pl.BlockSpec((2, HW), lambda b, t: (0, 0)),                 # coords
            pl.BlockSpec((w, w), lambda b, t: (0, 0)),                  # qxbase
            pl.BlockSpec((w, HW), lambda b, t: (0, 0)),                 # tile_mat
            pl.BlockSpec((Cs * h, HW), lambda b, t: (0, 0)),            # pybase
            pl.BlockSpec((Cblk, Cs * h), lambda b, t: (0, 0)),          # lsel
            pl.BlockSpec((1, Cs * h, w), lambda b, t: (b, 0, 0)),       # source
        ],
        out_specs=pl.BlockSpec((1, K_total, Cblk, HW),
                               lambda b, t: (b, 0, 0, t)),
        compiler_params=pltpu.CompilerParams(
            dimension_semantics=("parallel", "parallel"),
            vmem_limit_bytes=32 * 1024 * 1024),
    )(params, coords, qxbase, tile_mat, pybase, lsel, src2)

    # The kernel already emits the permuted layout; this reshape is a pure view.
    return out.reshape(bs, K_total * Cblk, d, h, w)


if __name__ == "__main__":
    bs, num_channels, d_frames, h, w = 2, 3, 3, 16, 16
    num_kp = 4
    kp_variance = 0.01

    key = jax.random.PRNGKey(0)
    k_img, k_kpd, k_kps = jax.random.split(key, 3)
    source_image = jax.random.normal(
        k_img, (bs, num_channels, 1, h, w), jnp.float32)
    kp_driving = {"mean": jax.random.uniform(
        k_kpd, (bs, d_frames, num_kp, 2), minval=-0.9, maxval=0.9,
        dtype=jnp.float32)}
    kp_source = {"mean": jax.random.uniform(
        k_kps, (bs, d_frames, num_kp, 2), minval=-0.9, maxval=0.9,
        dtype=jnp.float32)}

    fwd = functools.partial(
        movement_embedding_forward,
        num_kp=num_kp, kp_variance=kp_variance, num_channels=num_channels,
        use_deformed_source_image=True, use_difference=True, use_heatmap=True,
        add_bg_feature_map=True, heatmap_type='gaussian', norm_const='sum',
        scale_factor=1)

    out = jax.block_until_ready(fwd(source_image, kp_driving, kp_source))

    K_total = num_kp + 1
    Cblk = 1 + 2 + num_channels
    assert out.shape == (bs, K_total * Cblk, d_frames, h, w), out.shape
    assert bool(jnp.all(jnp.isfinite(out)))

    # Background keypoint: heatmap + kp-difference channels are exactly zero ...
    assert float(jnp.max(jnp.abs(out[:, 0]))) == 0.0
    assert float(jnp.max(jnp.abs(out[:, 1:3]))) == 0.0
    # ... and its "deformed" source is an identity resample of the source.
    bg_deformed = out[:, 3:3 + num_channels]                    # (bs, C, d, h, w)
    src_rep = jnp.broadcast_to(source_image[:, :, 0][:, :, None],
                               (bs, num_channels, d_frames, h, w))
    assert float(jnp.max(jnp.abs(bg_deformed - src_rep))) < 5e-2

    # Non-bg heatmaps are normalised to (approximately) unit spatial mass and
    # peak at the driving keypoint location.
    hm_channels = jnp.array([kk * Cblk for kk in range(1, K_total)])
    hm = out[:, hm_channels]                                    # (bs, K, d, h, w)
    hm_sums = jnp.sum(hm, axis=(-2, -1))
    assert float(jnp.max(jnp.abs(hm_sums - 1.0))) < 5e-2
    idx = jnp.argmax(hm.reshape(bs, num_kp, d_frames, h * w), axis=-1)
    px = (idx % w).astype(jnp.float32) * (2.0 / (w - 1)) - 1.0
    py = (idx // w).astype(jnp.float32) * (2.0 / (h - 1)) - 1.0
    kpd_x = jnp.transpose(kp_driving["mean"][..., 0], (0, 2, 1))
    kpd_y = jnp.transpose(kp_driving["mean"][..., 1], (0, 2, 1))
    assert float(jnp.max(jnp.abs(px - kpd_x))) < 0.1
    assert float(jnp.max(jnp.abs(py - kpd_y))) < 0.1

    # Difference channels broadcast (kp_source - kp_driving) exactly.
    diff_ref = kp_source["mean"] - kp_driving["mean"]           # (bs, d, K, 2)
    for kk in range(num_kp):
        ch = (kk + 1) * Cblk
        dmaps = out[:, ch + 1:ch + 3]                            # (bs, 2, d, h, w)
        want = jnp.transpose(diff_ref[:, :, kk, :], (0, 2, 1))[:, :, :, None, None]
        assert float(jnp.max(jnp.abs(dmaps - want))) < 1e-5

    # Integer-pixel translation: deformed source must equal a shifted copy of
    # the source with zero padding (checks the grid_sample axis conventions).
    dx_pix, dy_pix = 1, 2
    kp_drv2 = {"mean": jnp.zeros((bs, d_frames, num_kp, 2), jnp.float32)}
    shift = jnp.array([2.0 * dx_pix / (w - 1), 2.0 * dy_pix / (h - 1)],
                      jnp.float32)
    kp_src2 = {"mean": jnp.broadcast_to(shift, (bs, d_frames, num_kp, 2))}
    out2 = jax.block_until_ready(fwd(source_image, kp_drv2, kp_src2))
    src0 = source_image[:, :, 0]                                 # (bs, C, h, w)
    expected = jnp.zeros_like(src0)
    expected = expected.at[:, :, :h - dy_pix, :w - dx_pix].set(
        src0[:, :, dy_pix:, dx_pix:])
    expected = jnp.broadcast_to(expected[:, :, None],
                                (bs, num_channels, d_frames, h, w))
    deformed_k1 = out2[:, Cblk + 3:Cblk + 3 + num_channels]
    assert float(jnp.max(jnp.abs(deformed_k1 - expected))) < 5e-2

    print("KERNEL_OK")
</pallas_src>

<mosaic_0001>
module attributes {stable_mosaic.version = 11 : i64} {
  func.func @_movement_embedding_kernel(%arg0: i32, %arg1: i32, %arg2: memref<240xf32, #tpu.memory_space<smem>>, %arg3: memref<2x256xf32, #tpu.memory_space<vmem>>, %arg4: memref<16x16xf32, #tpu.memory_space<vmem>>, %arg5: memref<16x256xf32, #tpu.memory_space<vmem>>, %arg6: memref<48x256xf32, #tpu.memory_space<vmem>>, %arg7: memref<6x48xf32, #tpu.memory_space<vmem>>, %arg8: memref<1x48x16xf32, #tpu.memory_space<vmem>>, %arg9: memref<1x5x6x256xf32, #tpu.memory_space<vmem>>) attributes {dimension_semantics = [#tpu.dimension_semantics<parallel>, #tpu.dimension_semantics<parallel>], iteration_bounds = array<i64: 2, 3>, scalar_prefetch = 0 : i64, scratch_operands = 0 : i64, tpu.core_type = #tpu.core_type<tc>, window_params = [{transform_indices = @transform_0, window_bounds = array<i64: 240>}, {pipeline_mode = #tpu.pipeline_mode<synchronous>, transform_indices = @transform_1, window_bounds = array<i64: 2, 256>}, {pipeline_mode = #tpu.pipeline_mode<synchronous>, transform_indices = @transform_2, window_bounds = array<i64: 16, 16>}, {pipeline_mode = #tpu.pipeline_mode<synchronous>, transform_indices = @transform_3, window_bounds = array<i64: 16, 256>}, {pipeline_mode = #tpu.pipeline_mode<synchronous>, transform_indices = @transform_4, window_bounds = array<i64: 48, 256>}, {pipeline_mode = #tpu.pipeline_mode<synchronous>, transform_indices = @transform_5, window_bounds = array<i64: 6, 48>}, {transform_indices = @transform_6, window_bounds = array<i64: 1, 48, 16>}, {transform_indices = @transform_7, window_bounds = array<i64: 1, 5, 6, 256>}]} {
    %c0 = arith.constant 0 : index
    %c0_0 = arith.constant 0 : index
    %0 = vector.load %arg3[%c0, %c0_0] : memref<2x256xf32, #tpu.memory_space<vmem>>, vector<1x256xf32>
    %c1 = arith.constant 1 : index
    %c0_1 = arith.constant 0 : index
    %1 = vector.load %arg3[%c1, %c0_1] : memref<2x256xf32, #tpu.memory_space<vmem>>, vector<1x256xf32>
    %c0_2 = arith.constant 0 : index
    %c0_3 = arith.constant 0 : index
    %2 = vector.load %arg4[%c0_2, %c0_3] : memref<16x16xf32, #tpu.memory_space<vmem>>, vector<16x16xf32>
    %c0_4 = arith.constant 0 : index
    %c0_5 = arith.constant 0 : index
    %3 = vector.load %arg5[%c0_4, %c0_5] : memref<16x256xf32, #tpu.memory_space<vmem>>, vector<16x256xf32>
    %c0_6 = arith.constant 0 : index
    %c0_7 = arith.constant 0 : index
    %4 = vector.load %arg6[%c0_6, %c0_7] : memref<48x256xf32, #tpu.memory_space<vmem>>, vector<48x256xf32>
    %c0_8 = arith.constant 0 : index
    %c0_9 = arith.constant 0 : index
    %5 = vector.load %arg7[%c0_8, %c0_9] : memref<6x48xf32, #tpu.memory_space<vmem>>, vector<6x48xf32>
    %c0_10 = arith.constant 0 : index
    %c0_11 = arith.constant 0 : index
    %c0_12 = arith.constant 0 : index
    %6 = vector.load %arg8[%c0_10, %c0_11, %c0_12] : memref<1x48x16xf32, #tpu.memory_space<vmem>>, vector<1x48x16xf32>
    %7 = vector.shape_cast %6 : vector<1x48x16xf32> to vector<48x16xf32>
    %8 = tpu.iota {dimensions = array<i32: 0>} : vector<6x1xi32>
    %c3_i32 = arith.constant 3 : i32
    %9 = arith.muli %arg0, %c3_i32 : i32
    %10 = arith.addi %9, %arg1 : i32
    %c5_i32 = arith.constant 5 : i32
    %11 = arith.muli %10, %c5_i32 : i32
    %c0_i32 = arith.constant 0 : i32
    %12 = arith.addi %11, %c0_i32 : i32
    %c8_i32 = arith.constant 8 : i32
    %13 = arith.muli %12, %c8_i32 : i32
    %cst = arith.constant 0.000000e+00 : f32
    %14 = vector.broadcast %cst : f32 to vector<6x256xf32>
    %c0_i32_13 = arith.constant 0 : i32
    %15 = arith.addi %13, %c0_i32_13 : i32
    %16 = arith.index_cast %15 : i32 to index
    %17 = memref.load %arg2[%16] : memref<240xf32, #tpu.memory_space<smem>>
    %c1_i32 = arith.constant 1 : i32
    %18 = arith.addi %13, %c1_i32 : i32
    %19 = arith.index_cast %18 : i32 to index
    %20 = memref.load %arg2[%19] : memref<240xf32, #tpu.memory_space<smem>>
    %21 = vector.broadcast %17 : f32 to vector<1x256xf32>
    %22 = arith.subf %0, %21 : vector<1x256xf32>
    %23 = arith.mulf %22, %22 : vector<1x256xf32>
    %24 = vector.broadcast %20 : f32 to vector<1x256xf32>
    %25 = arith.subf %1, %24 : vector<1x256xf32>
    %26 = arith.mulf %25, %25 : vector<1x256xf32>
    %27 = arith.addf %23, %26 : vector<1x256xf32>
    %cst_14 = arith.constant -5.000000e+01 : f32
    %28 = vector.broadcast %cst_14 : f32 to vector<1x256xf32>
    %29 = arith.mulf %28, %27 : vector<1x256xf32>
    %30 = math.exp %29 : vector<1x256xf32>
    %cst_15 = arith.constant dense<0.000000e+00> : vector<1xf32>
    %31 = vector.multi_reduction <add>, %30, %cst_15 [1] : vector<1x256xf32> to vector<1xf32>
    %32 = vector.shape_cast %31 : vector<1xf32> to vector<1x1xf32>
    %33 = vector.broadcast %32 : vector<1x1xf32> to vector<1x256xf32>
    %34 = arith.divf %30, %33 : vector<1x256xf32>
    %c6_i32 = arith.constant 6 : i32
    %35 = arith.addi %13, %c6_i32 : i32
    %36 = arith.index_cast %35 : i32 to index
    %37 = memref.load %arg2[%36] : memref<240xf32, #tpu.memory_space<smem>>
    %38 = vector.broadcast %37 : f32 to vector<1x256xf32>
    %39 = arith.mulf %34, %38 : vector<1x256xf32>
    %c0_i32_16 = arith.constant 0 : i32
    %40 = vector.broadcast %c0_i32_16 : i32 to vector<6x1xi32>
    %41 = arith.cmpi eq, %8, %40 : vector<6x1xi32>
    %42 = arith.extui %41 : vector<6x1xi1> to vector<6x1xi32>
    %43 = arith.sitofp %42 : vector<6x1xi32> to vector<6x1xf32>
    %44 = vector.broadcast %43 : vector<6x1xf32> to vector<6x256xf32>
    %45 = vector.broadcast %39 : vector<1x256xf32> to vector<6x256xf32>
    %46 = arith.mulf %44, %45 : vector<6x256xf32>
    %47 = arith.addf %14, %46 : vector<6x256xf32>
    %c4_i32 = arith.constant 4 : i32
    %48 = arith.addi %13, %c4_i32 : i32
    %49 = arith.index_cast %48 : i32 to index
    %50 = memref.load %arg2[%49] : memref<240xf32, #tpu.memory_space<smem>>
    %c5_i32_17 = arith.constant 5 : i32
    %51 = arith.addi %13, %c5_i32_17 : i32
    %52 = arith.index_cast %51 : i32 to index
    %53 = memref.load %arg2[%52] : memref<240xf32, #tpu.memory_space<smem>>
    %c1_i32_18 = arith.constant 1 : i32
    %54 = vector.broadcast %c1_i32_18 : i32 to vector<6x1xi32>
    %55 = arith.cmpi eq, %8, %54 : vector<6x1xi32>
    %56 = arith.extui %55 : vector<6x1xi1> to vector<6x1xi32>
    %57 = arith.sitofp %56 : vector<6x1xi32> to vector<6x1xf32>
    %58 = vector.broadcast %50 : f32 to vector<6x1xf32>
    %59 = arith.mulf %57, %58 : vector<6x1xf32>
    %60 = vector.broadcast %59 : vector<6x1xf32> to vector<6x256xf32>
    %61 = arith.addf %47, %60 : vector<6x256xf32>
    %c2_i32 = arith.constant 2 : i32
    %62 = vector.broadcast %c2_i32 : i32 to vector<6x1xi32>
    %63 = arith.cmpi eq, %8, %62 : vector<6x1xi32>
    %64 = arith.extui %63 : vector<6x1xi1> to vector<6x1xi32>
    %65 = arith.sitofp %64 : vector<6x1xi32> to vector<6x1xf32>
    %66 = vector.broadcast %53 : f32 to vector<6x1xf32>
    %67 = arith.mulf %65, %66 : vector<6x1xf32>
    %68 = vector.broadcast %67 : vector<6x1xf32> to vector<6x256xf32>
    %69 = arith.addf %61, %68 : vector<6x256xf32>
    %cst_19 = arith.constant 7.500000e+00 : f32
    %70 = arith.mulf %50, %cst_19 : f32
    %cst_20 = arith.constant 7.500000e+00 : f32
    %71 = arith.mulf %53, %cst_20 : f32
    %72 = vector.broadcast %70 : f32 to vector<16x16xf32>
    %73 = arith.subf %72, %2 : vector<16x16xf32>
    %74 = math.absf %73 : vector<16x16xf32>
    %cst_21 = arith.constant 1.000000e+00 : f32
    %75 = vector.broadcast %cst_21 : f32 to vector<16x16xf32>
    %76 = arith.subf %75, %74 : vector<16x16xf32>
    %cst_22 = arith.constant 0.000000e+00 : f32
    %77 = vector.broadcast %cst_22 : f32 to vector<16x16xf32>
    %78 = arith.maximumf %77, %76 : vector<16x16xf32>
    %79 = vector.broadcast %71 : f32 to vector<48x256xf32>
    %80 = arith.subf %79, %4 : vector<48x256xf32>
    %81 = math.absf %80 : vector<48x256xf32>
    %cst_23 = arith.constant 1.000000e+00 : f32
    %82 = vector.broadcast %cst_23 : f32 to vector<48x256xf32>
    %83 = arith.subf %82, %81 : vector<48x256xf32>
    %cst_24 = arith.constant 0.000000e+00 : f32
    %84 = vector.broadcast %cst_24 : f32 to vector<48x256xf32>
    %85 = arith.maximumf %84, %83 : vector<48x256xf32>
    %cst_25 = arith.constant dense<0.000000e+00> : vector<48x16xf32>
    %86 = tpu.matmul %7, %78, %cst_25 {dimension_numbers = #tpu.dot_dimension_numbers<[1], [0], [0], [1], [0, 0, 1, 1], [], []>} : vector<48x16xf32>, vector<16x16xf32>, vector<48x16xf32> -> vector<48x16xf32>
    %cst_26 = arith.constant dense<0.000000e+00> : vector<48x256xf32>
    %87 = tpu.matmul %86, %3, %cst_26 {dimension_numbers = #tpu.dot_dimension_numbers<[1], [0], [0], [1], [0, 0, 1, 1], [], []>} : vector<48x16xf32>, vector<16x256xf32>, vector<48x256xf32> -> vector<48x256xf32>
    %88 = arith.mulf %87, %85 : vector<48x256xf32>
    %cst_27 = arith.constant dense<0.000000e+00> : vector<6x256xf32>
    %89 = tpu.matmul %5, %88, %cst_27 {dimension_numbers = #tpu.dot_dimension_numbers<[1], [0], [0], [1], [0, 0, 1, 1], [], []>} : vector<6x48xf32>, vector<48x256xf32>, vector<6x256xf32> -> vector<6x256xf32>
    %90 = arith.addf %69, %89 : vector<6x256xf32>
    %c3_i32_28 = arith.constant 3 : i32
    %91 = arith.muli %arg0, %c3_i32_28 : i32
    %92 = arith.addi %91, %arg1 : i32
    %c5_i32_29 = arith.constant 5 : i32
    %93 = arith.muli %92, %c5_i32_29 : i32
    %c1_i32_30 = arith.constant 1 : i32
    %94 = arith.addi %93, %c1_i32_30 : i32
    %c8_i32_31 = arith.constant 8 : i32
    %95 = arith.muli %94, %c8_i32_31 : i32
    %cst_32 = arith.constant 0.000000e+00 : f32
    %96 = vector.broadcast %cst_32 : f32 to vector<6x256xf32>
    %c0_i32_33 = arith.constant 0 : i32
    %97 = arith.addi %95, %c0_i32_33 : i32
    %98 = arith.index_cast %97 : i32 to index
    %99 = memref.load %arg2[%98] : memref<240xf32, #tpu.memory_space<smem>>
    %c1_i32_34 = arith.constant 1 : i32
    %100 = arith.addi %95, %c1_i32_34 : i32
    %101 = arith.index_cast %100 : i32 to index
    %102 = memref.load %arg2[%101] : memref<240xf32, #tpu.memory_space<smem>>
    %103 = vector.broadcast %99 : f32 to vector<1x256xf32>
    %104 = arith.subf %0, %103 : vector<1x256xf32>
    %105 = arith.mulf %104, %104 : vector<1x256xf32>
    %106 = vector.broadcast %102 : f32 to vector<1x256xf32>
    %107 = arith.subf %1, %106 : vector<1x256xf32>
    %108 = arith.mulf %107, %107 : vector<1x256xf32>
    %109 = arith.addf %105, %108 : vector<1x256xf32>
    %cst_35 = arith.constant -5.000000e+01 : f32
    %110 = vector.broadcast %cst_35 : f32 to vector<1x256xf32>
    %111 = arith.mulf %110, %109 : vector<1x256xf32>
    %112 = math.exp %111 : vector<1x256xf32>
    %cst_36 = arith.constant dense<0.000000e+00> : vector<1xf32>
    %113 = vector.multi_reduction <add>, %112, %cst_36 [1] : vector<1x256xf32> to vector<1xf32>
    %114 = vector.shape_cast %113 : vector<1xf32> to vector<1x1xf32>
    %115 = vector.broadcast %114 : vector<1x1xf32> to vector<1x256xf32>
    %116 = arith.divf %112, %115 : vector<1x256xf32>
    %c6_i32_37 = arith.constant 6 : i32
    %117 = arith.addi %95, %c6_i32_37 : i32
    %118 = arith.index_cast %117 : i32 to index
    %119 = memref.load %arg2[%118] : memref<240xf32, #tpu.memory_space<smem>>
    %120 = vector.broadcast %119 : f32 to vector<1x256xf32>
    %121 = arith.mulf %116, %120 : vector<1x256xf32>
    %c0_i32_38 = arith.constant 0 : i32
    %122 = vector.broadcast %c0_i32_38 : i32 to vector<6x1xi32>
    %123 = arith.cmpi eq, %8, %122 : vector<6x1xi32>
    %124 = arith.extui %123 : vector<6x1xi1> to vector<6x1xi32>
    %125 = arith.sitofp %124 : vector<6x1xi32> to vector<6x1xf32>
    %126 = vector.broadcast %125 : vector<6x1xf32> to vector<6x256xf32>
    %127 = vector.broadcast %121 : vector<1x256xf32> to vector<6x256xf32>
    %128 = arith.mulf %126, %127 : vector<6x256xf32>
    %129 = arith.addf %96, %128 : vector<6x256xf32>
    %c4_i32_39 = arith.constant 4 : i32
    %130 = arith.addi %95, %c4_i32_39 : i32
    %131 = arith.index_cast %130 : i32 to index
    %132 = memref.load %arg2[%131] : memref<240xf32, #tpu.memory_space<smem>>
    %c5_i32_40 = arith.constant 5 : i32
    %133 = arith.addi %95, %c5_i32_40 : i32
    %134 = arith.index_cast %133 : i32 to index
    %135 = memref.load %arg2[%134] : memref<240xf32, #tpu.memory_space<smem>>
    %c1_i32_41 = arith.constant 1 : i32
    %136 = vector.broadcast %c1_i32_41 : i32 to vector<6x1xi32>
    %137 = arith.cmpi eq, %8, %136 : vector<6x1xi32>
    %138 = arith.extui %137 : vector<6x1xi1> to vector<6x1xi32>
    %139 = arith.sitofp %138 : vector<6x1xi32> to vector<6x1xf32>
    %140 = vector.broadcast %132 : f32 to vector<6x1xf32>
    %141 = arith.mulf %139, %140 : vector<6x1xf32>
    %142 = vector.broadcast %141 : vector<6x1xf32> to vector<6x256xf32>
    %143 = arith.addf %129, %142 : vector<6x256xf32>
    %c2_i32_42 = arith.constant 2 : i32
    %144 = vector.broadcast %c2_i32_42 : i32 to vector<6x1xi32>
    %145 = arith.cmpi eq, %8, %144 : vector<6x1xi32>
    %146 = arith.extui %145 : vector<6x1xi1> to vector<6x1xi32>
    %147 = arith.sitofp %146 : vector<6x1xi32> to vector<6x1xf32>
    %148 = vector.broadcast %135 : f32 to vector<6x1xf32>
    %149 = arith.mulf %147, %148 : vector<6x1xf32>
    %150 = vector.broadcast %149 : vector<6x1xf32> to vector<6x256xf32>
    %151 = arith.addf %143, %150 : vector<6x256xf32>
    %cst_43 = arith.constant 7.500000e+00 : f32
    %152 = arith.mulf %132, %cst_43 : f32
    %cst_44 = arith.constant 7.500000e+00 : f32
    %153 = arith.mulf %135, %cst_44 : f32
    %154 = vector.broadcast %152 : f32 to vector<16x16xf32>
    %155 = arith.subf %154, %2 : vector<16x16xf32>
    %156 = math.absf %155 : vector<16x16xf32>
    %cst_45 = arith.constant 1.000000e+00 : f32
    %157 = vector.broadcast %cst_45 : f32 to vector<16x16xf32>
    %158 = arith.subf %157, %156 : vector<16x16xf32>
    %cst_46 = arith.constant 0.000000e+00 : f32
    %159 = vector.broadcast %cst_46 : f32 to vector<16x16xf32>
    %160 = arith.maximumf %159, %158 : vector<16x16xf32>
    %161 = vector.broadcast %153 : f32 to vector<48x256xf32>
    %162 = arith.subf %161, %4 : vector<48x256xf32>
    %163 = math.absf %162 : vector<48x256xf32>
    %cst_47 = arith.constant 1.000000e+00 : f32
    %164 = vector.broadcast %cst_47 : f32 to vector<48x256xf32>
    %165 = arith.subf %164, %163 : vector<48x256xf32>
    %cst_48 = arith.constant 0.000000e+00 : f32
    %166 = vector.broadcast %cst_48 : f32 to vector<48x256xf32>
    %167 = arith.maximumf %166, %165 : vector<48x256xf32>
    %cst_49 = arith.constant dense<0.000000e+00> : vector<48x16xf32>
    %168 = tpu.matmul %7, %160, %cst_49 {dimension_numbers = #tpu.dot_dimension_numbers<[1], [0], [0], [1], [0, 0, 1, 1], [], []>} : vector<48x16xf32>, vector<16x16xf32>, vector<48x16xf32> -> vector<48x16xf32>
    %cst_50 = arith.constant dense<0.000000e+00> : vector<48x256xf32>
    %169 = tpu.matmul %168, %3, %cst_50 {dimension_numbers = #tpu.dot_dimension_numbers<[1], [0], [0], [1], [0, 0, 1, 1], [], []>} : vector<48x16xf32>, vector<16x256xf32>, vector<48x256xf32> -> vector<48x256xf32>
    %170 = arith.mulf %169, %167 : vector<48x256xf32>
    %cst_51 = arith.constant dense<0.000000e+00> : vector<6x256xf32>
    %171 = tpu.matmul %5, %170, %cst_51 {dimension_numbers = #tpu.dot_dimension_numbers<[1], [0], [0], [1], [0, 0, 1, 1], [], []>} : vector<6x48xf32>, vector<48x256xf32>, vector<6x256xf32> -> vector<6x256xf32>
    %172 = arith.addf %151, %171 : vector<6x256xf32>
    %c3_i32_52 = arith.constant 3 : i32
    %173 = arith.muli %arg0, %c3_i32_52 : i32
    %174 = arith.addi %173, %arg1 : i32
    %c5_i32_53 = arith.constant 5 : i32
    %175 = arith.muli %174, %c5_i32_53 : i32
    %c2_i32_54 = arith.constant 2 : i32
    %176 = arith.addi %175, %c2_i32_54 : i32
    %c8_i32_55 = arith.constant 8 : i32
    %177 = arith.muli %176, %c8_i32_55 : i32
    %cst_56 = arith.constant 0.000000e+00 : f32
    %178 = vector.broadcast %cst_56 : f32 to vector<6x256xf32>
    %c0_i32_57 = arith.constant 0 : i32
    %179 = arith.addi %177, %c0_i32_57 : i32
    %180 = arith.index_cast %179 : i32 to index
    %181 = memref.load %arg2[%180] : memref<240xf32, #tpu.memory_space<smem>>
    %c1_i32_58 = arith.constant 1 : i32
    %182 = arith.addi %177, %c1_i32_58 : i32
    %183 = arith.index_cast %182 : i32 to index
    %184 = memref.load %arg2[%183] : memref<240xf32, #tpu.memory_space<smem>>
    %185 = vector.broadcast %181 : f32 to vector<1x256xf32>
    %186 = arith.subf %0, %185 : vector<1x256xf32>
    %187 = arith.mulf %186, %186 : vector<1x256xf32>
    %188 = vector.broadcast %184 : f32 to vector<1x256xf32>
    %189 = arith.subf %1, %188 : vector<1x256xf32>
    %190 = arith.mulf %189, %189 : vector<1x256xf32>
    %191 = arith.addf %187, %190 : vector<1x256xf32>
    %cst_59 = arith.constant -5.000000e+01 : f32
    %192 = vector.broadcast %cst_59 : f32 to vector<1x256xf32>
    %193 = arith.mulf %192, %191 : vector<1x256xf32>
    %194 = math.exp %193 : vector<1x256xf32>
    %cst_60 = arith.constant dense<0.000000e+00> : vector<1xf32>
    %195 = vector.multi_reduction <add>, %194, %cst_60 [1] : vector<1x256xf32> to vector<1xf32>
    %196 = vector.shape_cast %195 : vector<1xf32> to vector<1x1xf32>
    %197 = vector.broadcast %196 : vector<1x1xf32> to vector<1x256xf32>
    %198 = arith.divf %194, %197 : vector<1x256xf32>
    %c6_i32_61 = arith.constant 6 : i32
    %199 = arith.addi %177, %c6_i32_61 : i32
    %200 = arith.index_cast %199 : i32 to index
    %201 = memref.load %arg2[%200] : memref<240xf32, #tpu.memory_space<smem>>
    %202 = vector.broadcast %201 : f32 to vector<1x256xf32>
    %203 = arith.mulf %198, %202 : vector<1x256xf32>
    %c0_i32_62 = arith.constant 0 : i32
    %204 = vector.broadcast %c0_i32_62 : i32 to vector<6x1xi32>
    %205 = arith.cmpi eq, %8, %204 : vector<6x1xi32>
    %206 = arith.extui %205 : vector<6x1xi1> to vector<6x1xi32>
    %207 = arith.sitofp %206 : vector<6x1xi32> to vector<6x1xf32>
    %208 = vector.broadcast %207 : vector<6x1xf32> to vector<6x256xf32>
    %209 = vector.broadcast %203 : vector<1x256xf32> to vector<6x256xf32>
    %210 = arith.mulf %208, %209 : vector<6x256xf32>
    %211 = arith.addf %178, %210 : vector<6x256xf32>
    %c4_i32_63 = arith.constant 4 : i32
    %212 = arith.addi %177, %c4_i32_63 : i32
    %213 = arith.index_cast %212 : i32 to index
    %214 = memref.load %arg2[%213] : memref<240xf32, #tpu.memory_space<smem>>
    %c5_i32_64 = arith.constant 5 : i32
    %215 = arith.addi %177, %c5_i32_64 : i32
    %216 = arith.index_cast %215 : i32 to index
    %217 = memref.load %arg2[%216] : memref<240xf32, #tpu.memory_space<smem>>
    %c1_i32_65 = arith.constant 1 : i32
    %218 = vector.broadcast %c1_i32_65 : i32 to vector<6x1xi32>
    %219 = arith.cmpi eq, %8, %218 : vector<6x1xi32>
    %220 = arith.extui %219 : vector<6x1xi1> to vector<6x1xi32>
    %221 = arith.sitofp %220 : vector<6x1xi32> to vector<6x1xf32>
    %222 = vector.broadcast %214 : f32 to vector<6x1xf32>
    %223 = arith.mulf %221, %222 : vector<6x1xf32>
    %224 = vector.broadcast %223 : vector<6x1xf32> to vector<6x256xf32>
    %225 = arith.addf %211, %224 : vector<6x256xf32>
    %c2_i32_66 = arith.constant 2 : i32
    %226 = vector.broadcast %c2_i32_66 : i32 to vector<6x1xi32>
    %227 = arith.cmpi eq, %8, %226 : vector<6x1xi32>
    %228 = arith.extui %227 : vector<6x1xi1> to vector<6x1xi32>
    %229 = arith.sitofp %228 : vector<6x1xi32> to vector<6x1xf32>
    %230 = vector.broadcast %217 : f32 to vector<6x1xf32>
    %231 = arith.mulf %229, %230 : vector<6x1xf32>
    %232 = vector.broadcast %231 : vector<6x1xf32> to vector<6x256xf32>
    %233 = arith.addf %225, %232 : vector<6x256xf32>
    %cst_67 = arith.constant 7.500000e+00 : f32
    %234 = arith.mulf %214, %cst_67 : f32
    %cst_68 = arith.constant 7.500000e+00 : f32
    %235 = arith.mulf %217, %cst_68 : f32
    %236 = vector.broadcast %234 : f32 to vector<16x16xf32>
    %237 = arith.subf %236, %2 : vector<16x16xf32>
    %238 = math.absf %237 : vector<16x16xf32>
    %cst_69 = arith.constant 1.000000e+00 : f32
    %239 = vector.broadcast %cst_69 : f32 to vector<16x16xf32>
    %240 = arith.subf %239, %238 : vector<16x16xf32>
    %cst_70 = arith.constant 0.000000e+00 : f32
    %241 = vector.broadcast %cst_70 : f32 to vector<16x16xf32>
    %242 = arith.maximumf %241, %240 : vector<16x16xf32>
    %243 = vector.broadcast %235 : f32 to vector<48x256xf32>
    %244 = arith.subf %243, %4 : vector<48x256xf32>
    %245 = math.absf %244 : vector<48x256xf32>
    %cst_71 = arith.constant 1.000000e+00 : f32
    %246 = vector.broadcast %cst_71 : f32 to vector<48x256xf32>
    %247 = arith.subf %246, %245 : vector<48x256xf32>
    %cst_72 = arith.constant 0.000000e+00 : f32
    %248 = vector.broadcast %cst_72 : f32 to vector<48x256xf32>
    %249 = arith.maximumf %248, %247 : vector<48x256xf32>
    %cst_73 = arith.constant dense<0.000000e+00> : vector<48x16xf32>
    %250 = tpu.matmul %7, %242, %cst_73 {dimension_numbers = #tpu.dot_dimension_numbers<[1], [0], [0], [1], [0, 0, 1, 1], [], []>} : vector<48x16xf32>, vector<16x16xf32>, vector<48x16xf32> -> vector<48x16xf32>
    %cst_74 = arith.constant dense<0.000000e+00> : vector<48x256xf32>
    %251 = tpu.matmul %250, %3, %cst_74 {dimension_numbers = #tpu.dot_dimension_numbers<[1], [0], [0], [1], [0, 0, 1, 1], [], []>} : vector<48x16xf32>, vector<16x256xf32>, vector<48x256xf32> -> vector<48x256xf32>
    %252 = arith.mulf %251, %249 : vector<48x256xf32>
    %cst_75 = arith.constant dense<0.000000e+00> : vector<6x256xf32>
    %253 = tpu.matmul %5, %252, %cst_75 {dimension_numbers = #tpu.dot_dimension_numbers<[1], [0], [0], [1], [0, 0, 1, 1], [], []>} : vector<6x48xf32>, vector<48x256xf32>, vector<6x256xf32> -> vector<6x256xf32>
    %254 = arith.addf %233, %253 : vector<6x256xf32>
    %c3_i32_76 = arith.constant 3 : i32
    %255 = arith.muli %arg0, %c3_i32_76 : i32
    %256 = arith.addi %255, %arg1 : i32
    %c5_i32_77 = arith.constant 5 : i32
    %257 = arith.muli %256, %c5_i32_77 : i32
    %c3_i32_78 = arith.constant 3 : i32
    %258 = arith.addi %257, %c3_i32_78 : i32
    %c8_i32_79 = arith.constant 8 : i32
    %259 = arith.muli %258, %c8_i32_79 : i32
    %cst_80 = arith.constant 0.000000e+00 : f32
    %260 = vector.broadcast %cst_80 : f32 to vector<6x256xf32>
    %c0_i32_81 = arith.constant 0 : i32
    %261 = arith.addi %259, %c0_i32_81 : i32
    %262 = arith.index_cast %261 : i32 to index
    %263 = memref.load %arg2[%262] : memref<240xf32, #tpu.memory_space<smem>>
    %c1_i32_82 = arith.constant 1 : i32
    %264 = arith.addi %259, %c1_i32_82 : i32
    %265 = arith.index_cast %264 : i32 to index
    %266 = memref.load %arg2[%265] : memref<240xf32, #tpu.memory_space<smem>>
    %267 = vector.broadcast %263 : f32 to vector<1x256xf32>
    %268 = arith.subf %0, %267 : vector<1x256xf32>
    %269 = arith.mulf %268, %268 : vector<1x256xf32>
    %270 = vector.broadcast %266 : f32 to vector<1x256xf32>
    %271 = arith.subf %1, %270 : vector<1x256xf32>
    %272 = arith.mulf %271, %271 : vector<1x256xf32>
    %273 = arith.addf %269, %272 : vector<1x256xf32>
    %cst_83 = arith.constant -5.000000e+01 : f32
    %274 = vector.broadcast %cst_83 : f32 to vector<1x256xf32>
    %275 = arith.mulf %274, %273 : vector<1x256xf32>
    %276 = math.exp %275 : vector<1x256xf32>
    %cst_84 = arith.constant dense<0.000000e+00> : vector<1xf32>
    %277 = vector.multi_reduction <add>, %276, %cst_84 [1] : vector<1x256xf32> to vector<1xf32>
    %278 = vector.shape_cast %277 : vector<1xf32> to vector<1x1xf32>
    %279 = vector.broadcast %278 : vector<1x1xf32> to vector<1x256xf32>
    %280 = arith.divf %276, %279 : vector<1x256xf32>
    %c6_i32_85 = arith.constant 6 : i32
    %281 = arith.addi %259, %c6_i32_85 : i32
    %282 = arith.index_cast %281 : i32 to index
    %283 = memref.load %arg2[%282] : memref<240xf32, #tpu.memory_space<smem>>
    %284 = vector.broadcast %283 : f32 to vector<1x256xf32>
    %285 = arith.mulf %280, %284 : vector<1x256xf32>
    %c0_i32_86 = arith.constant 0 : i32
    %286 = vector.broadcast %c0_i32_86 : i32 to vector<6x1xi32>
    %287 = arith.cmpi eq, %8, %286 : vector<6x1xi32>
    %288 = arith.extui %287 : vector<6x1xi1> to vector<6x1xi32>
    %289 = arith.sitofp %288 : vector<6x1xi32> to vector<6x1xf32>
    %290 = vector.broadcast %289 : vector<6x1xf32> to vector<6x256xf32>
    %291 = vector.broadcast %285 : vector<1x256xf32> to vector<6x256xf32>
    %292 = arith.mulf %290, %291 : vector<6x256xf32>
    %293 = arith.addf %260, %292 : vector<6x256xf32>
    %c4_i32_87 = arith.constant 4 : i32
    %294 = arith.addi %259, %c4_i32_87 : i32
    %295 = arith.index_cast %294 : i32 to index
    %296 = memref.load %arg2[%295] : memref<240xf32, #tpu.memory_space<smem>>
    %c5_i32_88 = arith.constant 5 : i32
    %297 = arith.addi %259, %c5_i32_88 : i32
    %298 = arith.index_cast %297 : i32 to index
    %299 = memref.load %arg2[%298] : memref<240xf32, #tpu.memory_space<smem>>
    %c1_i32_89 = arith.constant 1 : i32
    %300 = vector.broadcast %c1_i32_89 : i32 to vector<6x1xi32>
    %301 = arith.cmpi eq, %8, %300 : vector<6x1xi32>
    %302 = arith.extui %301 : vector<6x1xi1> to vector<6x1xi32>
    %303 = arith.sitofp %302 : vector<6x1xi32> to vector<6x1xf32>
    %304 = vector.broadcast %296 : f32 to vector<6x1xf32>
    %305 = arith.mulf %303, %304 : vector<6x1xf32>
    %306 = vector.broadcast %305 : vector<6x1xf32> to vector<6x256xf32>
    %307 = arith.addf %293, %306 : vector<6x256xf32>
    %c2_i32_90 = arith.constant 2 : i32
    %308 = vector.broadcast %c2_i32_90 : i32 to vector<6x1xi32>
    %309 = arith.cmpi eq, %8, %308 : vector<6x1xi32>
    %310 = arith.extui %309 : vector<6x1xi1> to vector<6x1xi32>
    %311 = arith.sitofp %310 : vector<6x1xi32> to vector<6x1xf32>
    %312 = vector.broadcast %299 : f32 to vector<6x1xf32>
    %313 = arith.mulf %311, %312 : vector<6x1xf32>
    %314 = vector.broadcast %313 : vector<6x1xf32> to vector<6x256xf32>
    %315 = arith.addf %307, %314 : vector<6x256xf32>
    %cst_91 = arith.constant 7.500000e+00 : f32
    %316 = arith.mulf %296, %cst_91 : f32
    %cst_92 = arith.constant 7.500000e+00 : f32
    %317 = arith.mulf %299, %cst_92 : f32
    %318 = vector.broadcast %316 : f32 to vector<16x16xf32>
    %319 = arith.subf %318, %2 : vector<16x16xf32>
    %320 = math.absf %319 : vector<16x16xf32>
    %cst_93 = arith.constant 1.000000e+00 : f32
    %321 = vector.broadcast %cst_93 : f32 to vector<16x16xf32>
    %322 = arith.subf %321, %320 : vector<16x16xf32>
    %cst_94 = arith.constant 0.000000e+00 : f32
    %323 = vector.broadcast %cst_94 : f32 to vector<16x16xf32>
    %324 = arith.maximumf %323, %322 : vector<16x16xf32>
    %325 = vector.broadcast %317 : f32 to vector<48x256xf32>
    %326 = arith.subf %325, %4 : vector<48x256xf32>
    %327 = math.absf %326 : vector<48x256xf32>
    %cst_95 = arith.constant 1.000000e+00 : f32
    %328 = vector.broadcast %cst_95 : f32 to vector<48x256xf32>
    %329 = arith.subf %328, %327 : vector<48x256xf32>
    %cst_96 = arith.constant 0.000000e+00 : f32
    %330 = vector.broadcast %cst_96 : f32 to vector<48x256xf32>
    %331 = arith.maximumf %330, %329 : vector<48x256xf32>
    %cst_97 = arith.constant dense<0.000000e+00> : vector<48x16xf32>
    %332 = tpu.matmul %7, %324, %cst_97 {dimension_numbers = #tpu.dot_dimension_numbers<[1], [0], [0], [1], [0, 0, 1, 1], [], []>} : vector<48x16xf32>, vector<16x16xf32>, vector<48x16xf32> -> vector<48x16xf32>
    %cst_98 = arith.constant dense<0.000000e+00> : vector<48x256xf32>
    %333 = tpu.matmul %332, %3, %cst_98 {dimension_numbers = #tpu.dot_dimension_numbers<[1], [0], [0], [1], [0, 0, 1, 1], [], []>} : vector<48x16xf32>, vector<16x256xf32>, vector<48x256xf32> -> vector<48x256xf32>
    %334 = arith.mulf %333, %331 : vector<48x256xf32>
    %cst_99 = arith.constant dense<0.000000e+00> : vector<6x256xf32>
    %335 = tpu.matmul %5, %334, %cst_99 {dimension_numbers = #tpu.dot_dimension_numbers<[1], [0], [0], [1], [0, 0, 1, 1], [], []>} : vector<6x48xf32>, vector<48x256xf32>, vector<6x256xf32> -> vector<6x256xf32>
    %336 = arith.addf %315, %335 : vector<6x256xf32>
    %c3_i32_100 = arith.constant 3 : i32
    %337 = arith.muli %arg0, %c3_i32_100 : i32
    %338 = arith.addi %337, %arg1 : i32
    %c5_i32_101 = arith.constant 5 : i32
    %339 = arith.muli %338, %c5_i32_101 : i32
    %c4_i32_102 = arith.constant 4 : i32
    %340 = arith.addi %339, %c4_i32_102 : i32
    %c8_i32_103 = arith.constant 8 : i32
    %341 = arith.muli %340, %c8_i32_103 : i32
    %cst_104 = arith.constant 0.000000e+00 : f32
    %342 = vector.broadcast %cst_104 : f32 to vector<6x256xf32>
    %c0_i32_105 = arith.constant 0 : i32
    %343 = arith.addi %341, %c0_i32_105 : i32
    %344 = arith.index_cast %343 : i32 to index
    %345 = memref.load %arg2[%344] : memref<240xf32, #tpu.memory_space<smem>>
    %c1_i32_106 = arith.constant 1 : i32
    %346 = arith.addi %341, %c1_i32_106 : i32
    %347 = arith.index_cast %346 : i32 to index
    %348 = memref.load %arg2[%347] : memref<240xf32, #tpu.memory_space<smem>>
    %349 = vector.broadcast %345 : f32 to vector<1x256xf32>
    %350 = arith.subf %0, %349 : vector<1x256xf32>
    %351 = arith.mulf %350, %350 : vector<1x256xf32>
    %352 = vector.broadcast %348 : f32 to vector<1x256xf32>
    %353 = arith.subf %1, %352 : vector<1x256xf32>
    %354 = arith.mulf %353, %353 : vector<1x256xf32>
    %355 = arith.addf %351, %354 : vector<1x256xf32>
    %cst_107 = arith.constant -5.000000e+01 : f32
    %356 = vector.broadcast %cst_107 : f32 to vector<1x256xf32>
    %357 = arith.mulf %356, %355 : vector<1x256xf32>
    %358 = math.exp %357 : vector<1x256xf32>
    %cst_108 = arith.constant dense<0.000000e+00> : vector<1xf32>
    %359 = vector.multi_reduction <add>, %358, %cst_108 [1] : vector<1x256xf32> to vector<1xf32>
    %360 = vector.shape_cast %359 : vector<1xf32> to vector<1x1xf32>
    %361 = vector.broadcast %360 : vector<1x1xf32> to vector<1x256xf32>
    %362 = arith.divf %358, %361 : vector<1x256xf32>
    %c6_i32_109 = arith.constant 6 : i32
    %363 = arith.addi %341, %c6_i32_109 : i32
    %364 = arith.index_cast %363 : i32 to index
    %365 = memref.load %arg2[%364] : memref<240xf32, #tpu.memory_space<smem>>
    %366 = vector.broadcast %365 : f32 to vector<1x256xf32>
    %367 = arith.mulf %362, %366 : vector<1x256xf32>
    %c0_i32_110 = arith.constant 0 : i32
    %368 = vector.broadcast %c0_i32_110 : i32 to vector<6x1xi32>
    %369 = arith.cmpi eq, %8, %368 : vector<6x1xi32>
    %370 = arith.extui %369 : vector<6x1xi1> to vector<6x1xi32>
    %371 = arith.sitofp %370 : vector<6x1xi32> to vector<6x1xf32>
    %372 = vector.broadcast %371 : vector<6x1xf32> to vector<6x256xf32>
    %373 = vector.broadcast %367 : vector<1x256xf32> to vector<6x256xf32>
    %374 = arith.mulf %372, %373 : vector<6x256xf32>
    %375 = arith.addf %342, %374 : vector<6x256xf32>
    %c4_i32_111 = arith.constant 4 : i32
    %376 = arith.addi %341, %c4_i32_111 : i32
    %377 = arith.index_cast %376 : i32 to index
    %378 = memref.load %arg2[%377] : memref<240xf32, #tpu.memory_space<smem>>
    %c5_i32_112 = arith.constant 5 : i32
    %379 = arith.addi %341, %c5_i32_112 : i32
    %380 = arith.index_cast %379 : i32 to index
    %381 = memref.load %arg2[%380] : memref<240xf32, #tpu.memory_space<smem>>
    %c1_i32_113 = arith.constant 1 : i32
    %382 = vector.broadcast %c1_i32_113 : i32 to vector<6x1xi32>
    %383 = arith.cmpi eq, %8, %382 : vector<6x1xi32>
    %384 = arith.extui %383 : vector<6x1xi1> to vector<6x1xi32>
    %385 = arith.sitofp %384 : vector<6x1xi32> to vector<6x1xf32>
    %386 = vector.broadcast %378 : f32 to vector<6x1xf32>
    %387 = arith.mulf %385, %386 : vector<6x1xf32>
    %388 = vector.broadcast %387 : vector<6x1xf32> to vector<6x256xf32>
    %389 = arith.addf %375, %388 : vector<6x256xf32>
    %c2_i32_114 = arith.constant 2 : i32
    %390 = vector.broadcast %c2_i32_114 : i32 to vector<6x1xi32>
    %391 = arith.cmpi eq, %8, %390 : vector<6x1xi32>
    %392 = arith.extui %391 : vector<6x1xi1> to vector<6x1xi32>
    %393 = arith.sitofp %392 : vector<6x1xi32> to vector<6x1xf32>
    %394 = vector.broadcast %381 : f32 to vector<6x1xf32>
    %395 = arith.mulf %393, %394 : vector<6x1xf32>
    %396 = vector.broadcast %395 : vector<6x1xf32> to vector<6x256xf32>
    %397 = arith.addf %389, %396 : vector<6x256xf32>
    %cst_115 = arith.constant 7.500000e+00 : f32
    %398 = arith.mulf %378, %cst_115 : f32
    %cst_116 = arith.constant 7.500000e+00 : f32
    %399 = arith.mulf %381, %cst_116 : f32
    %400 = vector.broadcast %398 : f32 to vector<16x16xf32>
    %401 = arith.subf %400, %2 : vector<16x16xf32>
    %402 = math.absf %401 : vector<16x16xf32>
    %cst_117 = arith.constant 1.000000e+00 : f32
    %403 = vector.broadcast %cst_117 : f32 to vector<16x16xf32>
    %404 = arith.subf %403, %402 : vector<16x16xf32>
    %cst_118 = arith.constant 0.000000e+00 : f32
    %405 = vector.broadcast %cst_118 : f32 to vector<16x16xf32>
    %406 = arith.maximumf %405, %404 : vector<16x16xf32>
    %407 = vector.broadcast %399 : f32 to vector<48x256xf32>
    %408 = arith.subf %407, %4 : vector<48x256xf32>
    %409 = math.absf %408 : vector<48x256xf32>
    %cst_119 = arith.constant 1.000000e+00 : f32
    %410 = vector.broadcast %cst_119 : f32 to vector<48x256xf32>
    %411 = arith.subf %410, %409 : vector<48x256xf32>
    %cst_120 = arith.constant 0.000000e+00 : f32
    %412 = vector.broadcast %cst_120 : f32 to vector<48x256xf32>
    %413 = arith.maximumf %412, %411 : vector<48x256xf32>
    %cst_121 = arith.constant dense<0.000000e+00> : vector<48x16xf32>
    %414 = tpu.matmul %7, %406, %cst_121 {dimension_numbers = #tpu.dot_dimension_numbers<[1], [0], [0], [1], [0, 0, 1, 1], [], []>} : vector<48x16xf32>, vector<16x16xf32>, vector<48x16xf32> -> vector<48x16xf32>
    %cst_122 = arith.constant dense<0.000000e+00> : vector<48x256xf32>
    %415 = tpu.matmul %414, %3, %cst_122 {dimension_numbers = #tpu.dot_dimension_numbers<[1], [0], [0], [1], [0, 0, 1, 1], [], []>} : vector<48x16xf32>, vector<16x256xf32>, vector<48x256xf32> -> vector<48x256xf32>
    %416 = arith.mulf %415, %413 : vector<48x256xf32>
    %cst_123 = arith.constant dense<0.000000e+00> : vector<6x256xf32>
    %417 = tpu.matmul %5, %416, %cst_123 {dimension_numbers = #tpu.dot_dimension_numbers<[1], [0], [0], [1], [0, 0, 1, 1], [], []>} : vector<6x48xf32>, vector<48x256xf32>, vector<6x256xf32> -> vector<6x256xf32>
    %418 = arith.addf %397, %417 : vector<6x256xf32>
    %419 = vector.shape_cast %90 : vector<6x256xf32> to vector<1x6x256xf32>
    %420 = vector.shape_cast %172 : vector<6x256xf32> to vector<1x6x256xf32>
    %421 = vector.shape_cast %254 : vector<6x256xf32> to vector<1x6x256xf32>
    %422 = vector.shape_cast %336 : vector<6x256xf32> to vector<1x6x256xf32>
    %423 = vector.shape_cast %418 : vector<6x256xf32> to vector<1x6x256xf32>
    %424 = tpu.concatenate %419, %420, %421, %422, %423 in 0 : vector<1x6x256xf32>, vector<1x6x256xf32>, vector<1x6x256xf32>, vector<1x6x256xf32>, vector<1x6x256xf32> -> vector<5x6x256xf32>
    %c0_124 = arith.constant 0 : index
    %c0_125 = arith.constant 0 : index
    %c0_126 = arith.constant 0 : index
    %c0_127 = arith.constant 0 : index
    %425 = vector.load %arg9[%c0_124, %c0_125, %c0_126, %c0_127] : memref<1x5x6x256xf32, #tpu.memory_space<vmem>>, vector<1x5x6x256xf32>
    %426 = vector.shape_cast %425 : vector<1x5x6x256xf32> to vector<5x6x256xf32>
    %427 = vector.shape_cast %424 : vector<5x6x256xf32> to vector<1x5x6x256xf32>
    tpu.vector_store %arg9[%c0_124, %c0_125, %c0_126, %c0_127], %427 {strides = array<i32>} : memref<1x5x6x256xf32, #tpu.memory_space<vmem>>, vector<1x5x6x256xf32>,
    return
  }
  func.func @transform_0(%arg0: i32, %arg1: i32) -> i32 {
    %c0_i32 = arith.constant 0 : i32
    %c0_i32_0 = arith.constant 0 : i32
    return %c0_i32 : i32
  }
  func.func @transform_1(%arg0: i32, %arg1: i32) -> (i32, i32) {
    %c0_i32 = arith.constant 0 : i32
    %c0_i32_0 = arith.constant 0 : i32
    %c0_i32_1 = arith.constant 0 : i32
    return %c0_i32, %c0_i32_0 : i32, i32
  }
  func.func @transform_2(%arg0: i32, %arg1: i32) -> (i32, i32) {
    %c0_i32 = arith.constant 0 : i32
    %c0_i32_0 = arith.constant 0 : i32
    %c0_i32_1 = arith.constant 0 : i32
    return %c0_i32, %c0_i32_0 : i32, i32
  }
  func.func @transform_3(%arg0: i32, %arg1: i32) -> (i32, i32) {
    %c0_i32 = arith.constant 0 : i32
    %c0_i32_0 = arith.constant 0 : i32
    %c0_i32_1 = arith.constant 0 : i32
    return %c0_i32, %c0_i32_0 : i32, i32
  }
  func.func @transform_4(%arg0: i32, %arg1: i32) -> (i32, i32) {
    %c0_i32 = arith.constant 0 : i32
    %c0_i32_0 = arith.constant 0 : i32
    %c0_i32_1 = arith.constant 0 : i32
    return %c0_i32, %c0_i32_0 : i32, i32
  }
  func.func @transform_5(%arg0: i32, %arg1: i32) -> (i32, i32) {
    %c0_i32 = arith.constant 0 : i32
    %c0_i32_0 = arith.constant 0 : i32
    %c0_i32_1 = arith.constant 0 : i32
    return %c0_i32, %c0_i32_0 : i32, i32
  }
  func.func @transform_6(%arg0: i32, %arg1: i32) -> (i32, i32, i32) {
    %c0_i32 = arith.constant 0 : i32
    %c0_i32_0 = arith.constant 0 : i32
    %c0_i32_1 = arith.constant 0 : i32
    return %arg0, %c0_i32, %c0_i32_0 : i32, i32, i32
  }
  func.func @transform_7(%arg0: i32, %arg1: i32) -> (i32, i32, i32, i32) {
    %c0_i32 = arith.constant 0 : i32
    %c0_i32_0 = arith.constant 0 : i32
    %c0_i32_1 = arith.constant 0 : i32
    return %arg0, %c0_i32, %c0_i32_0, %arg1 : i32, i32, i32, i32
  }
}

</mosaic_0001>

<bundles_post_ra>
// kernel: tpu_custom_call.1
= control target key start
LH: loop header
LB: loop body
LE: loop exit
PB: predicated region body
PF: predicated region fallthrough
CT: control target
= control target key end

     0   :  { %s4114_s0 = inlined_call_operand.hbm [shape: f32[240], index: 0, kind: input, shape index: {}]   ;;  %s4115_s1 = inlined_call_operand.hbm [shape: f32[2,256], index: 1, kind: input, shape index: {}]   ;;  %s4116_s2 = inlined_call_operand.hbm [shape: f32[16,16], index: 2, kind: input, shape index: {}]   ;;  %s4117_s3 = inlined_call_operand.vmem [shape: f32[16,256], index: 3, kind: input, shape index: {}]   ;;  %s4118_s4 = inlined_call_operand.vmem [shape: f32[48,256], index: 4, kind: input, shape index: {}]   ;;  %s4119_s5 = inlined_call_operand.vmem [shape: f32[6,48], index: 5, kind: input, shape index: {}]   ;;  %s4120_s6 = inlined_call_operand.vmem [shape: f32[2,48,16], index: 6, kind: input, shape index: {}]   ;;  %s4121_s7 = inlined_call_operand.vmem [shape: f32[2,5,6,768], index: 7, kind: output, shape index: {}]  }
   0x1   :  { %4152 = sst [smem:[#allocation25_spill]] %s4114_s0 }
   0x2   :  { %4153 = sst [smem:[#allocation26_spill]] %s4115_s1 }
   0x3   :  { %4154 = sst [smem:[#allocation27_spill]] %s4116_s2 }
   0x4   :  { %4155 = sst [smem:[#allocation28_spill]] %s4120_s6 }
   0x5   :  { %12 = vsyncpa [#allocation4], 0 }
   0x6   :  { %13 = vsyncpa [#allocation3], 0 }
   0x7   :  { %14 = vsyncpa [#allocation7], 0  ;;  %s3216_s24 = smov 0   ;;  %s3218_s25 = smov 0  }
   0x8   :  { %s3220_s26 = smov 0   ;;  %s3222_s27 = smov 0  }
   0x9   :  { %s3224_s28 = smov 0   ;;  %s3226_s29 = smov 0  }
   0xa   :  { %s3228_s30 = smov 0  }
   0xb LB: > { %s2694_s8 = sadd.s32 4294967295, %s3168_s30   ;;  %s29_s9 = sadd.s32 1, %s3160_s28  ;;  %s3168_s30 = sphi %s3228_s30, %s20_s30   ;;  %s3164_s29 = sphi %s3226_s29, %s4222_s29   ;;  %s3160_s28 = sphi %s3224_s28, %s4221_s28   ;;  %s3156_s27 = sphi %s3222_s27, %s4220_s27   ;;  %s3152_s26 = sphi %s3220_s26, %s4219_s26   ;;  %s3148_s25 = sphi %s3218_s25, %s4218_s25   ;;  %s3144_s24 = sphi %s3216_s24, %s4217_s24  }
   0xc   : > { %p30_p0 = scmp.ge.s32.totalorder %s29_s9, 3  ;;  %s32_s10 = sadd.s32 1, %s3164_s29 }
   0xd   : > { %s193_s11 = sadd.s32 1, %s3148_s25  ;;  %p203_p1 = scmp.ne.s32.totalorder %s3148_s25, %s3144_s24 }
   0xe   : > { %s4224_s9 = smov (%p30_p0, %s29_s9), 0  ;;  %s4226_s10 = smov (!%p30_p0, %s32_s10), %s3164_s29 }
   0xf   : > { %s189_s12 = ssub.s32 %s3160_s28, %s4224_s9  ;;  %p204_p2 = scmp.eq.s32.totalorder %s2694_s8, 5 }
  0x10   : > { %p34_p3 = scmp.ge.s32.totalorder %s4226_s10, 2  ;;  %p2696_p4 = scmp.ge.s32.totalorder %s3168_s30, 1 }
  0x11   : > { %p3263_p5 = por %p204_p2, %p203_p1  ;;  %p217_p6 = scmp.lt.s32.totalorder %s3168_s30, 7 }
  0x12   : > { %s4228_s10 = smov (%p34_p3, %s4226_s10), 0  ;;  %p3276_p8 = scmp.eq.s32.totalorder %s2694_s8, 0 }
  0x13   : > { %p3270_p7 = pnand %p2696_p4, %p217_p6  ;;  %s188_s15 = ssub.s32 %s3164_s29, %s4228_s10 }
  0x14   : > { %s190_s17 = sor.u32 %s189_s12, %s188_s15  ;;  %s3170_s20 = smov [#allocation5]  }
  0x15   : > { %p2914_p9 = pneg %p3270_p7  ;;  %p191_p10 = scmp.eq.s32.totalorder %s190_s17, 0 }
  0x16   : > { %s239_s21 = sshll.u32 %s3170_s20, 4  ;;  %s3171_s22 = smov [#allocation2]   ;;  %s240_s21 = int_to_ptr.vmem [resolvable:$true] %s239_s21 }
  0x17   : > { %p3284_p11 = pnand %p3276_p8, %p2914_p9  ;;  %s4160_s0 = sld [smem:[#allocation25_spill]] }
  0x18   : > { %s3289_s19 = scalar_select %p191_p10, %s3148_s25, %s193_s11  }
  0x19   : > { %p3052_p12 = pneg %p3284_p11  ;;  %s3061_s12 = scalar_lea.vmem %s240_s21, 64 }
  0x1a   : > { %p3062_p13 = scmp.ne.s32.totalorder %s240_s21, %s3061_s12  ;;  %p3069_p2 = scmp.lt.s32.totalorder %s240_s21, %s240_s21 }
  0x1b   : > { %p3070_p3 = scmp.lt.s32.totalorder %s3061_s12, %s3061_s12 }
  0x1c   : > { %p3064_p0 = pnand %p3062_p13, %p3052_p12 }
  0x1d   : > { %2917 = dma.hbm_to_smem (!%p3284_p11), %s4160_s0, 32, %s3171_s22, [#allocation4]  }
  0x1e   : > { %p3065_p1 = pneg %p3064_p0  ;;  %p3071_p4 = por %p3070_p3, %p3069_p2 }
  0x20   : > { %p3072_p6 = pnand %p3071_p4, %p3065_p1 }
  0x22   : > { %3075 = shalt.err (!%p3072_p6)
}
  0x23   : > { %s4161_s1 = sld [smem:[#allocation26_spill]]  ;;  %s3172_s17 = smov [#allocation6]  }
  0x24   : > { %s249_s20 = sshll.u32 %s3172_s17, 4  ;;  %s250_s20 = int_to_ptr.vmem [resolvable:$true] %s249_s20 }
  0x25   : > { %s3087_s22 = scalar_lea.vmem %s250_s20, 256  ;;  %p3095_p0 = scmp.lt.s32.totalorder %s250_s20, %s250_s20 }
  0x26   : > { %p3088_p9 = scmp.ne.s32.totalorder %s250_s20, %s3087_s22  ;;  %p3096_p2 = scmp.lt.s32.totalorder %s3087_s22, %s3087_s22 }
  0x28   : > { %p3090_p10 = pnand %p3088_p9, %p3052_p12  ;;  %p3097_p1 = por %p3096_p2, %p3095_p0 }
  0x29   : > { %2920 = dma.hbm_to_vmem [thread:$0]  (!%p3284_p11), %s4161_s1, 64, %s240_s21, [#allocation3]  }
  0x2a   : > { %p3091_p13 = pneg %p3090_p10 }
  0x2c   : > { %p3098_p3 = pnand %p3097_p1, %p3091_p13 }
  0x2e   : > { %3101 = shalt.err (!%p3098_p3)
}
  0x2f   : > { %s3173_s23 = smov 128   ;;  %s3174_s8 = smov 8  }
  0x30   : > { %s4162_s2 = sld [smem:[#allocation27_spill]] }
  0x32   : > { %282 = sbr.rel (%p3270_p7) target bundleno = 2431 (0x97f), region = 48 }
  0x36   : > { %2923 = dma.hbm_to_vmem [thread:$0]  (!%p3284_p11), %s4162_s2, 256, %s250_s20, [#allocation7], %s3173_s23, %s3173_s23, %s3174_s8  }
  0x37   : > { %3131 = dma.done.wait (%p3276_p8), [#allocation4], 32  }
  0x38   : > { %3133 = vsyncadd (%p3276_p8), [#allocation4], 4294967264 }
  0x39   : > { %3135 = dma.done.wait (%p3276_p8), [#allocation3], 64  }
  0x3a   : > { %3137 = vsyncadd (%p3276_p8), [#allocation3], 4294967232 }
  0x3b   : > { %3139 = dma.done.wait (%p3276_p8), [#allocation7], 256  }
  0x3c   : > { %3141 = vsyncadd (%p3276_p8), [#allocation7], 4294967040 }
  0x3d   : > { %296 = sfence }
  0x3e   : > { %s358_s14 = smul.u32 3, %s3156_s27  ;;  %p322_p7 = scmp.lt.s32.totalorder %s3156_s27, 1  ;;  %vm499_vm0 = vcmask 130048   ;;  %v3347_v1 = vld [vmem:[#allocation6] sm:$0xff]  ;;  %v3349_v2 = vld [vmem:[#allocation6 + $0x8] sm:$0xff]  ;;  %v3360_v13 = vld [vmem:[%s4117_s3 + $0x18] sm:$0xff]  ;;  %v356_v39 = vlaneseq }
  0x3f   : > { %s4163_s6 = sld [smem:[#allocation28_spill]]  ;;  %4164 = vst [vmem:[#allocation12_spill] sm:$0xff] %v3349_v2  ;;  %4165 = vst [vmem:[#allocation13_spill] sm:$0xff] %v3360_v13  ;;  %v3388_v18 = vld [vmem:[%s4117_s3 + $0x10] sm:$0xff]  ;;  %v3394_v19 = vld [vmem:[%s4117_s3 + $0x8] sm:$0xff]  ;;  %v4122_v21 = vmov 0.0  }
  0x40   : > { %s359_s18 = sadd.s32 %s3152_s26, %s358_s14  ;;  %4166 = vst [vmem:[#allocation14_spill] sm:$0xff] %v3388_v18  ;;  %4167 = vst [vmem:[#allocation15_spill] sm:$0xff] %v3394_v19  ;;  %v3400_v20 = vld [vmem:[%s4117_s3] sm:$0xff]  ;;  %812 = vmatprep.mubr.f32.mxu0 %v4122_v21  ;;  %v3429_v40 = vshrl.u32 %v356_v39, 7  ;;  %vm385_vm1 = vcmask 1040384   ;;  %v3462_v52 = vld [vmem:[%s4118_s4 + $0x58] sm:$0xff] }
  0x41   : > { %s3331_s11 = smul.u32 40, %s359_s18  ;;  %4168 = vst [vmem:[#allocation16_spill] sm:$0xff] %v3400_v20  ;;  %v3423_v28 = vld [vmem:[#allocation5] ss:$2 sm:$0x3]  ;;  %v3467_v53 = vld [vmem:[%s4118_s4 + $0x50] sm:$0xff] }
  0x42   : > { %s323_s15 = scalar_select %p322_p7, %s3156_s27, 1  ;;  %v3425_v29 = vld [vmem:[#allocation5 + $0x1] ss:$2 sm:$0x3]  ;;  %v3432_v41 = vsub.s32 0, %v3429_v40  ;;  %v3435_v42 = vsub.s32 1, %v3429_v40 }
  0x43   : > { %s421_s17 = sadd.s32 4, %s3331_s11  ;;  %s361_s21 = sld [smem:[#allocation2 + %s3331_s11]]  ;;  %v3474_v56 = vld [vmem:[%s4118_s4 + $0x48] sm:$0xff]  ;;  %v3481_v57 = vld [vmem:[%s4118_s4 + $0x40] sm:$0xff]  ;;  %v3489_v60 = vld [vmem:[%s4118_s4 + $0x38] sm:$0xff]  ;;  %vm744_vm2 = vcmask 392192  }
  0x44   : > { %s3335_s20 = sld [smem:[#allocation2 + %s421_s17]]  ;;  %s2900_s22 = smul.u32 48, %s323_s15  ;;  %4169 = vst [vmem:[#allocation17_spill] sm:$0xff] %v3489_v60  ;;  %v3495_v62 = vld [vmem:[%s4118_s4 + $0x30] sm:$0xff]  ;;  %vm403_vm3 = vcmp.eq.s32.totalorder %v3429_v40, 0  ;;  %vm425_vm4 = vcmp.eq.s32.totalorder %v3429_v40, 1 }
  0x45   : > { %s423_s18 = sadd.s32 5, %s3331_s11  ;;  %s3451_s17 = sadd.s32 8, %s3331_s11  ;;  %4170 = vst [vmem:[#allocation18_spill] sm:$0xff] %v3495_v62  ;;  %vm432_vm5 = vcmp.eq.s32.totalorder %v3429_v40, 2 }
  0x46   : > { %s3340_s8 = scalar_lea.vmem %s4163_s6, %s2900_s22  ;;  %s3446_s15 = sld [smem:[#allocation2 + %s423_s18]] }
  0x47   : > { %v3343_v0 = vld [vmem:[%s3340_s8] sm:$0xff]  ;;  %v3355_v12 = vld [vmem:[%s3340_s8 + $0x8] sm:$0xff]  ;;  %v3363_v14 = vld [vmem:[%s3340_s8 + $0x10] sm:$0xff]  ;;  %s880_s16 = sadd.s32 4, %s3451_s17  ;;  %s399_s18 = sadd.s32 6, %s3331_s11 }
  0x48   : > { %2838 = vmatprep.mubr.msk.f32.mxu1 %vm499_vm0, %v3343_v0  ;;  %v3371_v15 = vld [vmem:[%s3340_s8 + $0x18] sm:$0xff]  ;;  %v3374_v16 = vld [vmem:[%s3340_s8 + $0x20] sm:$0xff]  ;;  %v3381_v17 = vld [vmem:[%s3340_s8 + $0x28] sm:$0xff]  ;;  %s3476_s1 = sld [smem:[#allocation2 + %s880_s16]]  ;;  %s3626_s16 = sadd.s32 16, %s3331_s11 }
  0x49   : > { %v364_v30 = vstv %s361_s21  ;;  %s400_s23 = sld [smem:[#allocation2 + %s399_s18]] }
  0x4a   : > { %s439_s12 = smul.f32 7.5, %s3335_s20  ;;  %v365_v31 = vsub.f32 %v3423_v28, %v364_v30 }
  0x4c   : > { %v441_v3 = vstv %s439_s12  ;;  %s362_s12 = sadd.s32 1, %s3331_s11  ;;  %v366_v34 = vmul.f32 %v365_v31, %v365_v31  ;;  %s440_s22 = smul.f32 7.5, %s3446_s15 }
  0x4d   : > { %v442_v4 = vsub.f32 %v441_v3, %v3347_v1  ;;  %v443_v5 = vsub.f32 %v441_v3, %v3349_v2  ;;  %s363_s14 = sld [smem:[#allocation2 + %s362_s12]]  ;;  %v3501_v3 = vld [vmem:[%s4118_s4 + $0x28] sm:$0xff] }
  0x4e   : > { %v450_v54 = vstv %s440_s22  ;;  %4171 = vst [vmem:[#allocation19_spill] sm:$0xff] %v3501_v3  ;;  %s892_s2 = smul.f32 7.5, %s3476_s1  ;;  %s319_s22 = sand.u32 1, %s3144_s24  }
  0x4f   : > { %v445_v6 = vand.u32 2147483647, %v443_v5  ;;  %v444_v7 = vand.u32 2147483647, %v442_v4  ;;  %v462_v58 = vsub.f32 %v450_v54, %v3462_v52  ;;  %v461_v61 = vsub.f32 %v450_v54, %v3467_v53  ;;  %s825_s24 = sadd.s32 1, %s3451_s17 }
  0x50   : > { %v460_v63 = vsub.f32 %v450_v54, %v3474_v56  ;;  %v459_v5 = vsub.f32 %v450_v54, %v3481_v57  ;;  %s826_s12 = sld [smem:[#allocation2 + %s825_s24]] }
  0x51   : > { %v447_v8 = vsub.f32 1.0, %v445_v6  ;;  %v446_v9 = vsub.f32 1.0, %v444_v7  ;;  %v3509_v6 = vld [vmem:[%s4118_s4 + $0x20] sm:$0xff]  ;;  %v458_v7 = vsub.f32 %v450_v54, %v3489_v60 }
  0x52   : > { %4172 = vst [vmem:[#allocation20_spill] sm:$0xff] %v3509_v6  ;;  %v471_v31 = vand.u32 2147483647, %v459_v5 }
  0x53   : > { %v449_v10 = vmax.f32 %v447_v8, 0.0  ;;  %v448_v11 = vmax.f32 %v446_v9, 0.0  ;;  %v367_v32 = vstv %s363_s14  ;;  %v474_v8 = vand.u32 2147483647, %v462_v58  ;;  %v3515_v9 = vld [vmem:[%s4118_s4 + $0x18] sm:$0xff]  ;;  %s1309_s14 = sadd.s32 4, %s3626_s16 }
  0x54   : > { %v368_v33 = vsub.f32 %v3425_v29, %v367_v32  ;;  %4173 = vst [vmem:[#allocation21_spill] sm:$0xff] %v3515_v9  ;;  %v3534_v32 = vld [vmem:[%s4118_s4] sm:$0xff]  ;;  %v483_v58 = vsub.f32 1.0, %v471_v31  ;;  %s3636_s18 = sld [smem:[#allocation2 + %s1309_s14]] }
  0x55   : > { %2834 = vmatprep.subr.mxu1 %v449_v10  ;;  %4176 = vst [vmem:[#allocation24_spill] sm:$0xff] %v3534_v32 }
  0x56   : > { %2835 = vmatpush3.msra.mxu1 %v449_v10  ;;  %v369_v35 = vmul.f32 %v368_v33, %v368_v33  ;;  %v457_v10 = vsub.f32 %v450_v54, %v3495_v62  ;;  %v454_v33 = vsub.f32 %v450_v54, %v3515_v9 }
  0x57   : > { %2836 = vmatprep.subr.mxu1 %v448_v11 }
  0x58   : > { %2837 = vmatpush3.msra.mxu1 %v448_v11  ;;  %v370_v36 = vadd.f32 %v369_v35, %v366_v34  ;;  %v470_v34 = vand.u32 2147483647, %v458_v7  ;;  %v486_v35 = vsub.f32 1.0, %v474_v8  ;;  %v466_v5 = vand.u32 2147483647, %v454_v33 }
  0x59   : > { %2839 = vmatmul.mubr.msk.f32.vlgmr.msra.gmra.mxu1 %vm499_vm0, %v3355_v12  ;;  %659 = vmatprep.subr.mxu1 %v3360_v13 }
  0x5a   : > { %2841 = vmatprep.mubr.msk.f32.mxu1 %vm499_vm0, %v3363_v14  ;;  %660 = vmatpush1.msra.mxu1 %v3388_v18  ;;  %v371_v37 = vmul.f32 -50.0, %v370_v36 }
  0x5b   : > { %661 = vmatprep.subr.mxu1 %v3394_v19 }
  0x5c   : > { %662 = vmatpush1.msra.mxu1 %v3400_v20  ;;  %v372_v38 = vmul.f32 1.442695, %v371_v37  ;;  %v469_v37 = vand.u32 2147483647, %v457_v10 }
  0x5d   : > { %2842 = vmatmul.mubr.msk.f32.gmra.mxu1 %vm499_vm0, %v3371_v15  ;;  %1093 = vmatprep.subr.mxu1 %v3360_v13 }
  0x5e   : > { %2844 = vmatprep.mubr.msk.f32.mxu1 %vm499_vm0, %v3374_v16  ;;  %2992 = vpow2.f32 %v372_v38  ;;  %v481_v8 = vsub.f32 1.0, %v469_v37 }
  0x61   : > { %2845 = vmatmul.mubr.msk.f32.gmra.mxu1 %vm499_vm0, %v3381_v17 }
  0x62   : > { %695 = vmatprep.mubr.f32.mxu1 %v4122_v21 }
  0x6b   : > { %v3437_v43 = vpop.eup %2992 }
  0x6c   : > { %v378_v44 = vrot.slane %v3437_v43, %v3432_v41  ;;  %v382_v45 = vrot.slane %v3437_v43, %v3435_v42 }
  0x6e   : > { %v386_v46 = vsel %vm385_vm1, %v378_v44, 0.0  ;;  %v387_v47 = vsel %vm385_vm1, %v382_v45, 0.0 }
  0x6f   : > { %v388_v48 = vadd.f32 %v387_v47, %v386_v46  ;;  %v451_v47 = vsub.f32 %v450_v54, %v3534_v32 }
  0x71   : > { %389 = vadd.xlane.f32.xlu0 %v388_v48 }
 0x119   : > { %v2840_v22 = vpop.f32.mrf.mxu1 }
 0x11b   : > { %v584_v23 = vpop.f32.mrf.mxu1 }
 0x11c   : > { %2715 = vmatmul.mubr.msk.f32.vlgmr.msra.gmra.mxu1 %vm499_vm0, %v584_v23  ;;  %v3521_v23 = vld [vmem:[%s4118_s4 + $0x10] sm:$0xff] }
 0x11d   : > { %701 = vmatprep.mubr.f32.mxu1 %v4122_v21  ;;  %1094 = vmatpush1.msra.mxu1 %v3388_v18  ;;  %v2843_v24 = vpop.f32.mrf.mxu1  ;;  %4174 = vst [vmem:[#allocation22_spill] sm:$0xff] %v3521_v23  ;;  %v453_v36 = vsub.f32 %v450_v54, %v3521_v23  ;;  %v495_v23 = vmax.f32 %v483_v58, 0.0 }
 0x11e   : > { %1095 = vmatprep.subr.mxu1 %v3394_v19 }
 0x11f   : > { %1096 = vmatpush1.msra.mxu1 %v3400_v20  ;;  %v594_v25 = vpop.f32.mrf.mxu1  ;;  %v498_v20 = vmax.f32 %v486_v35, 0.0  ;;  %v465_v7 = vand.u32 2147483647, %v453_v36  ;;  %v493_v35 = vmax.f32 %v481_v8, 0.0 }
 0x120   : > { %2716 = vmatmul.mubr.msk.f32.gmra.mxu1 %vm499_vm0, %v2840_v22  ;;  %v473_v22 = vand.u32 2147483647, %v461_v61 }
 0x121   : > { %707 = vmatprep.mubr.f32.mxu1 %v4122_v21  ;;  %v2846_v26 = vpop.f32.mrf.mxu1 }
 0x122   : > { %v485_v39 = vsub.f32 1.0, %v473_v22 }
 0x123   : > { %v604_v27 = vpop.f32.mrf.mxu1 }
 0x124   : > { %2717 = vmatmul.mubr.msk.f32.gmra.mxu1 %vm499_vm0, %v594_v25  ;;  %v472_v25 = vand.u32 2147483647, %v460_v63  ;;  %v894_v63 = vstv %s892_s2  ;;  %v497_v19 = vmax.f32 %v485_v39, 0.0  ;;  %s882_s2 = sadd.s32 5, %s3451_s17 }
 0x125   : > { %713 = vmatprep.mubr.f32.mxu1 %v4122_v21  ;;  %v895_v33 = vsub.f32 %v894_v63, %v3347_v1  ;;  %s3621_s6 = sld [smem:[#allocation2 + %s882_s2]]  ;;  %s3725_s2 = sadd.s32 24, %s3331_s11 }
 0x126   : > { %v484_v46 = vsub.f32 1.0, %v472_v25 }
 0x127   : > { %v897_v58 = vand.u32 2147483647, %v895_v33 }
 0x128   : > { %2718 = vmatmul.mubr.msk.f32.gmra.mxu1 %vm499_vm0, %v2843_v24  ;;  %v456_v24 = vsub.f32 %v450_v54, %v3501_v3  ;;  %v496_v22 = vmax.f32 %v484_v46, 0.0 }
 0x129   : > { %719 = vmatprep.mubr.f32.mxu1 %v4122_v21 }
 0x12a   : > { %v468_v45 = vand.u32 2147483647, %v456_v24  ;;  %v463_v24 = vand.u32 2147483647, %v451_v47 }
 0x12b   : > { %s893_s21 = smul.f32 7.5, %s3621_s6 }
 0x12c   : > { %2719 = vmatmul.mubr.msk.f32.gmra.mxu1 %vm499_vm0, %v604_v27  ;;  %v455_v27 = vsub.f32 %v450_v54, %v3509_v6  ;;  %v480_v13 = vsub.f32 1.0, %v468_v45  ;;  %v475_v45 = vsub.f32 1.0, %v463_v24 }
 0x12d   : > { %725 = vmatprep.mubr.f32.mxu1 %v4122_v21 }
 0x12e   : > { %v467_v48 = vand.u32 2147483647, %v455_v27  ;;  %v478_v27 = vsub.f32 1.0, %v466_v5  ;;  %v492_v39 = vmax.f32 %v480_v13, 0.0  ;;  %v487_v13 = vmax.f32 %v475_v45, 0.0 }
 0x130   : > { %2720 = vmatmul.mubr.msk.f32.gmra.mxu1 %vm499_vm0, %v2846_v26  ;;  %v3527_v26 = vld [vmem:[%s4118_s4 + $0x8] sm:$0xff]  ;;  %v479_v25 = vsub.f32 1.0, %v467_v48  ;;  %v490_v47 = vmax.f32 %v478_v27, 0.0  ;;  %v435_v27 = vstv %s3446_s15  ;;  %s824_s15 = sld [smem:[#allocation2 + %s3451_s17]] }
 0x131   : > { %1129 = vmatprep.mubr.f32.mxu1 %v4122_v21  ;;  %4175 = vst [vmem:[#allocation23_spill] sm:$0xff] %v3527_v26  ;;  %v452_v44 = vsub.f32 %v450_v54, %v3527_v26  ;;  %v482_v21 = vsub.f32 1.0, %v470_v34  ;;  %v896_v26 = vsub.f32 %v894_v63, %v3349_v2  ;;  %v477_v34 = vsub.f32 1.0, %v465_v7 }
 0x132   : > { %v491_v46 = vmax.f32 %v479_v25, 0.0 }
 0x133   : > { %v464_v10 = vand.u32 2147483647, %v452_v44  ;;  %v494_v31 = vmax.f32 %v482_v21, 0.0  ;;  %v898_v44 = vand.u32 2147483647, %v896_v26  ;;  %v489_v21 = vmax.f32 %v477_v34, 0.0 }
 0x135   : > { %v476_v37 = vsub.f32 1.0, %v464_v10 }
 0x137   : > { %v488_v63 = vmax.f32 %v476_v37, 0.0 }
 0x1dc   : > { %v3448_v49 = vpop.f32.mrf.mxu1 }
 0x1de   : > { %v3454_v50 = vpop.f32.mrf.mxu1 }
 0x1e0   : > { %v3457_v51 = vpop.f32.mrf.mxu1 }
 0x1e2   : > { %v3469_v55 = vpop.f32.mrf.mxu1 }
 0x1e3   : > { %v735_v26 = vmul.f32 %v3469_v55, %v490_v47 }
 0x1e4   : > { %v3484_v59 = vpop.f32.mrf.mxu1 }
 0x1e6   : > { %v3503_v4 = vpop.f32.mrf.mxu1 }
 0x1e7   : > { %v737_v5 = vmul.f32 %v3503_v4, %v492_v39  ;;  %v3551_v4 = vld [vmem:[%s4119_s5] sm:$0x3f] }
 0x1e8   : > { %v715_v11 = vpop.f32.mrf.mxu1 }
 0x1ea   : > { %v717_v30 = vpop.f32.mrf.mxu1 }
 0x1eb   : > { %v739_v48 = vmul.f32 %v717_v30, %v494_v31  ;;  %v734_v30 = vmul.f32 %v3457_v51, %v489_v21 }
 0x1ec   : > { %v721_v38 = vpop.f32.mrf.mxu1 }
 0x1ed   : > { %v740_v2 = vmul.f32 %v721_v38, %v495_v23  ;;  %v899_v23 = vsub.f32 1.0, %v897_v58  ;;  %v401_v38 = vstv %s400_s23  ;;  %s1321_s23 = smul.f32 7.5, %s3636_s18 }
 0x1ee   : > { %v723_v61 = vpop.f32.mrf.mxu1 }
 0x1ef   : > { %v741_v9 = vmul.f32 %v723_v61, %v496_v22  ;;  %v901_v55 = vmax.f32 %v899_v23, 0.0  ;;  %v428_v22 = vstv %s3335_s20  ;;  %s2899_s20 = smul.u32 80, %s319_s22  ;;  %s861_s22 = sadd.s32 6, %s3451_s17 }
 0x1f0   : > { %v727_v18 = vpop.f32.mrf.mxu1  ;;  %s1253_s17 = sld [smem:[#allocation2 + %s3626_s16]] }
 0x1f1   : > { %v742_v36 = vmul.f32 %v727_v18, %v497_v19  ;;  %v900_v18 = vsub.f32 1.0, %v898_v44  ;;  %v736_v19 = vmul.f32 %v3484_v59, %v491_v46  ;;  %s3592_s0 = scalar_lea.vmem [#allocation8], %s2899_s20  ;;  %s862_s20 = sld [smem:[#allocation2 + %s861_s22]] }
 0x1f2   : > { %v729_v54 = vpop.f32.mrf.mxu1 }
 0x1f3   : > { %v743_v32 = vmul.f32 %v729_v54, %v498_v20  ;;  %v738_v20 = vmul.f32 %v715_v11, %v493_v35  ;;  %v732_v11 = vmul.f32 %v3448_v49, %v487_v13  ;;  %v4177_v49 = vmov 0.0  }
 0x1f4   : > { %v3575_v8 = vsel %vm403_vm3, 1.0, %v4177_v49  ;;  %v3578_v10 = vsel %vm425_vm4, 1.0, %v4177_v49  ;;  %v3586_v54 = vsel %vm432_vm5, 1.0, %v4177_v49 }
 0x1f5   : > { %768 = vmatprep.subr.mxu0 %v743_v32  ;;  %v429_v25 = vmul.f32 %v3578_v10, %v428_v22  ;;  %v436_v34 = vmul.f32 %v3586_v54, %v435_v27 }
 0x1f6   : > { %769 = vmatpush1.msra.mxu0 %v742_v36 }
 0x1f7   : > { %770 = vmatprep.subr.mxu0 %v741_v9  ;;  %v733_v9 = vmul.f32 %v3454_v50, %v488_v63  ;;  %v390_v50 = vpop.xlane.xlu0 %389  ;;  %v827_v63 = vstv %s824_s15  ;;  %s1311_s15 = sadd.s32 5, %s3626_s16 }
 0x1f8   : > { %771 = vmatpush1.msra.mxu0 %v740_v2  ;;  %v902_v2 = vmax.f32 %v900_v18, 0.0  ;;  %v395_v51 = vrot.slane %v390_v50, %v3432_v41  ;;  %v828_v18 = vsub.f32 %v3423_v28, %v827_v63  ;;  %v4179_v63 = vld [vmem:[#allocation22_spill] sm:$0xff] }
 0x1f9   : > { %772 = vmatprep.subr.mxu0 %v739_v48 }
 0x1fa   : > { %773 = vmatpush1.msra.mxu0 %v738_v20  ;;  %2994 = vrcp.f32 %v395_v51 }
 0x1fb   : > { %774 = vmatprep.subr.mxu0 %v737_v5  ;;  %v830_v5 = vstv %s826_s12  ;;  %s3720_s12 = sld [smem:[#allocation2 + %s1311_s15]] }
 0x1fc   : > { %775 = vmatpush1.msra.mxu0 %v736_v19  ;;  %v831_v13 = vsub.f32 %v3425_v29, %v830_v5  ;;  %v829_v19 = vmul.f32 %v828_v18, %v828_v18 }
 0x1fd   : > { %776 = vmatprep.subr.mxu0 %v735_v26 }
 0x1fe   : > { %777 = vmatpush1.msra.mxu0 %v734_v30  ;;  %v832_v26 = vmul.f32 %v831_v13, %v831_v13 }
 0x1ff   : > { %778 = vmatprep.subr.mxu0 %v733_v9 }
 0x200   : > { %779 = vmatpush1.msra.mxu0 %v732_v11  ;;  %v833_v23 = vadd.f32 %v832_v26, %v829_v19  ;;  %v4180_v26 = vld [vmem:[#allocation23_spill] sm:$0xff] }
 0x201   : > { %2721 = vmatmul.mubr.msk.f32.vlgmr.msra.gmra.mxu0 %vm744_vm2, %v3551_v4  ;;  %2847 = vmatprep.subr.mxu0 %v902_v2 }
 0x202   : > { %2848 = vmatpush3.msra.mxu0 %v902_v2  ;;  %2851 = vmatprep.mubr.msk.f32.mxu0 %vm499_vm0, %v3343_v0  ;;  %v834_v30 = vmul.f32 -50.0, %v833_v23 }
 0x203   : > { %2849 = vmatprep.subr.mxu0 %v901_v55 }
 0x204   : > { %2850 = vmatpush3.msra.mxu0 %v901_v55  ;;  %v835_v9 = vmul.f32 1.442695, %v834_v30 }
 0x205   : > { %2852 = vmatmul.mubr.msk.f32.vlgmr.msra.gmra.mxu0 %vm499_vm0, %v3355_v12 }
 0x206   : > { %2854 = vmatprep.mubr.msk.f32.mxu0 %vm499_vm0, %v3363_v14  ;;  %2996 = vpow2.f32 %v835_v9 }
 0x207   : > { %v2995_v59 = vpop.eup %2994 }
 0x208   : > { %v398_v32 = vmul.f32 %v2995_v59, %v3437_v43 }
 0x209   : > { %2855 = vmatmul.mubr.msk.f32.gmra.mxu0 %vm499_vm0, %v3371_v15 }
 0x20a   : > { %2857 = vmatprep.mubr.msk.f32.mxu0 %vm499_vm0, %v3374_v16  ;;  %v402_v61 = vmul.f32 %v401_v38, %v398_v32 }
 0x20c   : > { %v410_v7 = vrot.slane %v402_v61, %v3432_v41  ;;  %v414_v43 = vrot.slane %v402_v61, %v3435_v42 }
 0x20d   : > { %2858 = vmatmul.mubr.msk.f32.gmra.mxu0 %vm499_vm0, %v3381_v17 }
 0x20e   : > { %1242 = vmatprep.mubr.f32.mxu0 %v4177_v49  ;;  %v417_v24 = vmul.f32 %v3575_v8, %v410_v7  ;;  %v418_v31 = vmul.f32 %v3575_v8, %v414_v43  ;;  %v903_v7 = vstv %s893_s21  ;;  %s1738_s21 = sadd.s32 4, %s3725_s2 }
 0x20f   : > { %v915_v43 = vsub.f32 %v903_v7, %v3462_v52  ;;  %v913_v27 = vsub.f32 %v903_v7, %v3474_v56  ;;  %v906_v5 = vsub.f32 %v903_v7, %v4179_v63  ;;  %v905_v23 = vsub.f32 %v903_v7, %v4180_v26  ;;  %s3735_s14 = sld [smem:[#allocation2 + %s1738_s21]] }
 0x210   : > { %v430_v33 = vadd.f32 %v429_v25, %v417_v24  ;;  %v431_v35 = vadd.f32 %v429_v25, %v418_v31  ;;  %v914_v25 = vsub.f32 %v903_v7, %v3467_v53 }
 0x212   : > { %v437_v36 = vadd.f32 %v436_v34, %v430_v33  ;;  %v438_v40 = vadd.f32 %v436_v34, %v431_v35  ;;  %v912_v33 = vsub.f32 %v903_v7, %v3481_v57  ;;  %v911_v34 = vsub.f32 %v903_v7, %v3489_v60 }
 0x213   : > { %v3612_v2 = vpop.eup %2996  ;;  %v927_v35 = vand.u32 2147483647, %v915_v43  ;;  %v1323_v43 = vstv %s1321_s23 }
 0x214   : > { %v841_v11 = vrot.slane %v3612_v2, %v3432_v41  ;;  %v845_v55 = vrot.slane %v3612_v2, %v3435_v42 }
 0x215   : > { %s1750_s23 = smul.f32 7.5, %s3735_s14 }
 0x216   : > { %v848_v50 = vsel %vm385_vm1, %v841_v11, 0.0  ;;  %v849_v51 = vsel %vm385_vm1, %v845_v55, 0.0  ;;  %v4181_v11 = vld [vmem:[#allocation24_spill] sm:$0xff] }
 0x217   : > { %v850_v59 = vadd.f32 %v849_v51, %v848_v50  ;;  %v904_v55 = vsub.f32 %v903_v7, %v4181_v11 }
 0x219   : > { %851 = vadd.xlane.f32.xlu0 %v850_v59 }
 0x2c1   : > { %v814_v37 = vpop.f32.mrf.mxu0 }
 0x2c2   : > { %v819_v39 = vadd.f32 %v814_v37, %v437_v36  ;;  %v910_v36 = vsub.f32 %v903_v7, %v3495_v62  ;;  %v926_v37 = vand.u32 2147483647, %v914_v25 }
 0x2c3   : > { %v816_v44 = vpop.f32.mrf.mxu0 }
 0x2c4   : > { %2538 = vst [vmem:[%s3592_s0] sm:$0x3f] %v819_v39  ;;  %v820_v45 = vadd.f32 %v816_v44, %v438_v40  ;;  %v909_v39 = vsub.f32 %v903_v7, %v3501_v3  ;;  %v925_v44 = vand.u32 2147483647, %v913_v27  ;;  %v922_v18 = vand.u32 2147483647, %v910_v36  ;;  %v4182_v3 = vld [vmem:[#allocation12_spill] sm:$0xff] }
 0x2c5   : > { %v2853_v46 = vpop.f32.mrf.mxu0  ;;  %v938_v19 = vsub.f32 1.0, %v926_v37  ;;  %v917_v36 = vand.u32 2147483647, %v905_v23  ;;  %v1325_v26 = vsub.f32 %v1323_v43, %v4182_v3 }
 0x2c6   : > { %2539 = vst [vmem:[%s3592_s0 + $0x8] sm:$0x3f] %v820_v45  ;;  %v908_v45 = vsub.f32 %v903_v7, %v3509_v6  ;;  %v921_v30 = vand.u32 2147483647, %v909_v39  ;;  %v937_v9 = vsub.f32 1.0, %v925_v44 }
 0x2c7   : > { %v1018_v47 = vpop.f32.mrf.mxu0  ;;  %v916_v39 = vand.u32 2147483647, %v904_v55  ;;  %v1327_v23 = vand.u32 2147483647, %v1325_v26 }
 0x2c8   : > { %2729 = vmatmul.mubr.msk.f32.vlgmr.msra.gmra.mxu1 %vm499_vm0, %v1018_v47  ;;  %v924_v47 = vand.u32 2147483647, %v912_v33  ;;  %v920_v50 = vand.u32 2147483647, %v908_v45  ;;  %v933_v6 = vsub.f32 1.0, %v921_v30  ;;  %v949_v37 = vmax.f32 %v937_v9, 0.0 }
 0x2c9   : > { %1135 = vmatprep.mubr.f32.mxu1 %v4177_v49  ;;  %v2856_v48 = vpop.f32.mrf.mxu0  ;;  %v928_v30 = vsub.f32 1.0, %v916_v39 }
 0x2ca   : > { %v936_v51 = vsub.f32 1.0, %v924_v47  ;;  %v932_v44 = vsub.f32 1.0, %v920_v50 }
 0x2cb   : > { %v1028_v58 = vpop.f32.mrf.mxu0 }
 0x2cc   : > { %2730 = vmatmul.mubr.msk.f32.gmra.mxu1 %vm499_vm0, %v2853_v46  ;;  %v948_v62 = vmax.f32 %v936_v51, 0.0  ;;  %v944_v9 = vmax.f32 %v932_v44, 0.0 }
 0x2cd   : > { %1141 = vmatprep.mubr.f32.mxu1 %v4177_v49  ;;  %v2859_v21 = vpop.f32.mrf.mxu0 }
 0x2cf   : > { %v1038_v20 = vpop.f32.mrf.mxu0 }
 0x2d0   : > { %2731 = vmatmul.mubr.msk.f32.gmra.mxu1 %vm499_vm0, %v1028_v58 }
 0x2d1   : > { %1147 = vmatprep.mubr.f32.mxu1 %v4177_v49 }
 0x2d4   : > { %2732 = vmatmul.mubr.msk.f32.gmra.mxu1 %vm499_vm0, %v2856_v48  ;;  %v4178_v48 = vld [vmem:[#allocation21_spill] sm:$0xff] }
 0x2d5   : > { %1153 = vmatprep.mubr.f32.mxu1 %v4177_v49  ;;  %v907_v58 = vsub.f32 %v903_v7, %v4178_v48  ;;  %v950_v48 = vmax.f32 %v938_v19, 0.0  ;;  %v945_v19 = vmax.f32 %v933_v6, 0.0  ;;  %v940_v6 = vmax.f32 %v928_v30, 0.0 }
 0x2d7   : > { %v919_v25 = vand.u32 2147483647, %v907_v58  ;;  %v1324_v58 = vsub.f32 %v1323_v43, %v3347_v1 }
 0x2d8   : > { %2733 = vmatmul.mubr.msk.f32.gmra.mxu1 %vm499_vm0, %v1038_v20  ;;  %v939_v20 = vsub.f32 1.0, %v927_v35  ;;  %v934_v35 = vsub.f32 1.0, %v922_v18  ;;  %v929_v18 = vsub.f32 1.0, %v917_v36 }
 0x2d9   : > { %1159 = vmatprep.mubr.f32.mxu1 %v4177_v49  ;;  %v931_v45 = vsub.f32 1.0, %v919_v25  ;;  %v1326_v51 = vand.u32 2147483647, %v1324_v58 }
 0x2da   : > { %v951_v33 = vmax.f32 %v939_v20, 0.0  ;;  %v946_v20 = vmax.f32 %v934_v35, 0.0  ;;  %v941_v1 = vmax.f32 %v929_v18, 0.0  ;;  %v888_v35 = vstv %s3621_s6  ;;  %s1322_s6 = smul.f32 7.5, %s3720_s12 }
 0x2db   : > { %v943_v55 = vmax.f32 %v931_v45, 0.0  ;;  %v889_v39 = vmul.f32 %v3586_v54, %v888_v35 }
 0x2dc   : > { %2734 = vmatmul.mubr.msk.f32.gmra.mxu1 %vm499_vm0, %v2859_v21  ;;  %v923_v21 = vand.u32 2147483647, %v911_v34  ;;  %v918_v34 = vand.u32 2147483647, %v906_v5 }
 0x2dd   : > { %1671 = vmatprep.mubr.f32.mxu1 %v4177_v49 }
 0x2de   : > { %v935_v27 = vsub.f32 1.0, %v923_v21  ;;  %v930_v21 = vsub.f32 1.0, %v918_v34 }
 0x2e0   : > { %v947_v47 = vmax.f32 %v935_v27, 0.0  ;;  %v942_v25 = vmax.f32 %v930_v21, 0.0 }
 0x388   : > { %v3623_v32 = vpop.f32.mrf.mxu1 }
 0x38a   : > { %v3629_v38 = vpop.f32.mrf.mxu1 }
 0x38c   : > { %v3632_v61 = vpop.f32.mrf.mxu1 }
 0x38e   : > { %v3634_v22 = vpop.f32.mrf.mxu1 }
 0x38f   : > { %v1169_v26 = vmul.f32 %v3634_v22, %v943_v55  ;;  %v4186_v22 = vld [vmem:[#allocation16_spill] sm:$0xff] }
 0x390   : > { %v3639_v24 = vpop.f32.mrf.mxu1 }
 0x392   : > { %v3643_v31 = vpop.f32.mrf.mxu1 }
 0x393   : > { %v1171_v43 = vmul.f32 %v3643_v31, %v945_v19 }
 0x394   : > { %v1149_v40 = vpop.f32.mrf.mxu1 }
 0x395   : > { %v1172_v27 = vmul.f32 %v1149_v40, %v946_v20 }
 0x396   : > { %v1151_v46 = vpop.f32.mrf.mxu1 }
 0x397   : > { %v1173_v50 = vmul.f32 %v1151_v46, %v947_v47  ;;  %v1168_v46 = vmul.f32 %v3632_v61, %v942_v25  ;;  %v4185_v61 = vld [vmem:[#allocation15_spill] sm:$0xff] }
 0x398   : > { %v1155_v13 = vpop.f32.mrf.mxu1 }
 0x399   : > { %v1174_v3 = vmul.f32 %v1155_v13, %v948_v62  ;;  %v1328_v62 = vsub.f32 1.0, %v1326_v51  ;;  %v1166_v13 = vmul.f32 %v3623_v32, %v940_v6  ;;  %v4184_v32 = vld [vmem:[#allocation14_spill] sm:$0xff] }
 0x39a   : > { %v1157_v59 = vpop.f32.mrf.mxu1 }
 0x39b   : > { %v1175_v60 = vmul.f32 %v1157_v59, %v949_v37  ;;  %v1330_v31 = vmax.f32 %v1328_v62, 0.0  ;;  %v884_v59 = vstv %s3476_s1  ;;  %s1254_s1 = sadd.s32 1, %s3626_s16 }
 0x39c   : > { %v1161_v63 = vpop.f32.mrf.mxu1  ;;  %v885_v34 = vmul.f32 %v3578_v10, %v884_v59  ;;  %s1255_s24 = sld [smem:[#allocation2 + %s1254_s1]]  ;;  %s3870_s1 = sadd.s32 32, %s3331_s11 }
 0x39d   : > { %v1176_v5 = vmul.f32 %v1161_v63, %v950_v48  ;;  %v1329_v48 = vsub.f32 1.0, %v1327_v23  ;;  %v1170_v63 = vmul.f32 %v3639_v24, %v944_v9  ;;  %v1256_v9 = vstv %s1253_s17 }
 0x39e   : > { %v1163_v7 = vpop.f32.mrf.mxu1  ;;  %v1257_v55 = vsub.f32 %v3423_v28, %v1256_v9 }
 0x39f   : > { %v1177_v11 = vmul.f32 %v1163_v7, %v951_v33  ;;  %v1331_v40 = vmax.f32 %v1329_v48, 0.0 }
 0x3a0   : > { %v1258_v51 = vmul.f32 %v1257_v55, %v1257_v55 }
 0x3a1   : > { %1198 = vmatprep.subr.mxu0 %v1177_v11  ;;  %v863_v11 = vstv %s862_s20 }
 0x3a2   : > { %1199 = vmatpush1.msra.mxu0 %v1176_v5 }
 0x3a3   : > { %1200 = vmatprep.subr.mxu0 %v1175_v60  ;;  %v1167_v60 = vmul.f32 %v3629_v38, %v941_v1  ;;  %v4183_v38 = vld [vmem:[#allocation13_spill] sm:$0xff] }
 0x3a4   : > { %1201 = vmatpush1.msra.mxu0 %v1174_v3  ;;  %v1259_v3 = vstv %s1255_s24  ;;  %s2167_s24 = sadd.s32 4, %s3870_s1 }
 0x3a5   : > { %1202 = vmatprep.subr.mxu0 %v1173_v50  ;;  %v1260_v50 = vsub.f32 %v3425_v29, %v1259_v3  ;;  %v1752_v3 = vstv %s1750_s23  ;;  %s1290_s23 = sadd.s32 6, %s3626_s16  ;;  %s1682_s16 = sld [smem:[#allocation2 + %s3725_s2]] }
 0x3a6   : > { %1203 = vmatpush1.msra.mxu0 %v1172_v27  ;;  %s1291_s22 = sld [smem:[#allocation2 + %s1290_s23]] }
 0x3a7   : > { %1204 = vmatprep.subr.mxu0 %v1171_v43  ;;  %v1261_v25 = vmul.f32 %v1260_v50, %v1260_v50  ;;  %s3880_s15 = sld [smem:[#allocation2 + %s2167_s24]]  ;;  %s2148_s24 = sadd.s32 6, %s3870_s1 }
 0x3a8   : > { %1205 = vmatpush1.msra.mxu0 %v1170_v63 }
 0x3a9   : > { %1206 = vmatprep.subr.mxu0 %v1169_v26  ;;  %v1262_v27 = vadd.f32 %v1261_v25, %v1258_v51 }
 0x3aa   : > { %1207 = vmatpush1.msra.mxu0 %v1168_v46 }
 0x3ab   : > { %1208 = vmatprep.subr.mxu0 %v1167_v60  ;;  %v1263_v1 = vmul.f32 -50.0, %v1262_v27 }
 0x3ac   : > { %1209 = vmatpush1.msra.mxu0 %v1166_v13 }
 0x3ad   : > { %2735 = vmatmul.mubr.msk.f32.vlgmr.msra.gmra.mxu0 %vm744_vm2, %v3551_v4  ;;  %2860 = vmatprep.subr.mxu0 %v1331_v40  ;;  %v1264_v43 = vmul.f32 1.442695, %v1263_v1 }
 0x3ae   : > { %2861 = vmatpush3.msra.mxu0 %v1331_v40  ;;  %2864 = vmatprep.mubr.msk.f32.mxu0 %vm499_vm0, %v3343_v0  ;;  %v852_v0 = vpop.xlane.xlu0 %851  ;;  %v1332_v40 = vstv %s1322_s6  ;;  %s2149_s6 = sld [smem:[#allocation2 + %s2148_s24]] }
 0x3af   : > { %2862 = vmatprep.subr.mxu0 %v1330_v31 }
 0x3b0   : > { %2863 = vmatpush3.msra.mxu0 %v1330_v31  ;;  %v1344_v31 = vsub.f32 %v1332_v40, %v3462_v52 }
 0x3b1   : > { %2865 = vmatmul.mubr.msk.f32.vlgmr.msra.gmra.mxu0 %vm499_vm0, %v3355_v12  ;;  %1522 = vmatprep.subr.mxu0 %v4183_v38  ;;  %v857_v12 = vrot.slane %v852_v0, %v3432_v41  ;;  %v1341_v0 = vsub.f32 %v1332_v40, %v3481_v57  ;;  %v4192_v57 = vld [vmem:[#allocation22_spill] sm:$0xff] }
 0x3b2   : > { %2867 = vmatprep.mubr.msk.f32.mxu0 %vm499_vm0, %v3363_v14  ;;  %1523 = vmatpush1.msra.mxu0 %v4184_v32  ;;  %v1343_v32 = vsub.f32 %v1332_v40, %v3467_v53 }
 0x3b3   : > { %1524 = vmatprep.subr.mxu0 %v4185_v61  ;;  %2998 = vrcp.f32 %v857_v12  ;;  %v1342_v61 = vsub.f32 %v1332_v40, %v3474_v56  ;;  %v4187_v12 = vld [vmem:[#allocation17_spill] sm:$0xff]  ;;  %v1353_v53 = vand.u32 2147483647, %v1341_v0 }
 0x3b4   : > { %1525 = vmatpush1.msra.mxu0 %v4186_v22  ;;  %3000 = vpow2.f32 %v1264_v43  ;;  %v1355_v59 = vand.u32 2147483647, %v1343_v32  ;;  %v4191_v56 = vld [vmem:[#allocation21_spill] sm:$0xff] }
 0x3b5   : > { %2868 = vmatmul.mubr.msk.f32.gmra.mxu0 %vm499_vm0, %v3371_v15 }
 0x3b6   : > { %2870 = vmatprep.mubr.msk.f32.mxu0 %vm499_vm0, %v3374_v16 }
 0x3b9   : > { %2871 = vmatmul.mubr.msk.f32.gmra.mxu0 %vm499_vm0, %v3381_v17 }
 0x3ba   : > { %1558 = vmatprep.mubr.f32.mxu0 %v4177_v49 }
 0x3c0   : > { %v2999_v14 = vpop.eup %2998 }
 0x3c1   : > { %v860_v24 = vmul.f32 %v2999_v14, %v3612_v2  ;;  %v3711_v48 = vpop.eup %3000  ;;  %v1340_v14 = vsub.f32 %v1332_v40, %v4187_v12 }
 0x3c2   : > { %v1270_v6 = vrot.slane %v3711_v48, %v3432_v41  ;;  %v1274_v63 = vrot.slane %v3711_v48, %v3435_v42 }
 0x3c3   : > { %v864_v15 = vmul.f32 %v863_v11, %v860_v24  ;;  %v1356_v24 = vand.u32 2147483647, %v1344_v31  ;;  %v4188_v11 = vld [vmem:[#allocation18_spill] sm:$0xff] }
 0x3c4   : > { %v1277_v26 = vsel %vm385_vm1, %v1270_v6, 0.0  ;;  %v1278_v28 = vsel %vm385_vm1, %v1274_v63, 0.0 }
 0x3c5   : > { %v869_v16 = vrot.slane %v864_v15, %v3432_v41  ;;  %v873_v17 = vrot.slane %v864_v15, %v3435_v42  ;;  %v1279_v29 = vadd.f32 %v1278_v28, %v1277_v26  ;;  %v1339_v15 = vsub.f32 %v1332_v40, %v4188_v11  ;;  %v3754_v28 = vld [vmem:[#allocation6 + $0x8] sm:$0xff] }
 0x3c7   : > { %v876_v33 = vmul.f32 %v3575_v8, %v869_v16  ;;  %v877_v36 = vmul.f32 %v3575_v8, %v873_v17  ;;  %1280 = vadd.xlane.f32.xlu1 %v1279_v29  ;;  %v4189_v17 = vld [vmem:[#allocation19_spill] sm:$0xff]  ;;  %v1754_v29 = vsub.f32 %v1752_v3, %v3754_v28 }
 0x3c8   : > { %v1338_v52 = vsub.f32 %v1332_v40, %v4189_v17 }
 0x3c9   : > { %v886_v37 = vadd.f32 %v885_v34, %v876_v33  ;;  %v887_v2 = vadd.f32 %v885_v34, %v877_v36  ;;  %v1354_v33 = vand.u32 2147483647, %v1342_v61  ;;  %v4190_v34 = vld [vmem:[#allocation20_spill] sm:$0xff] }
 0x3ca   : > { %v1337_v35 = vsub.f32 %v1332_v40, %v4190_v34 }
 0x3cb   : > { %v890_v44 = vadd.f32 %v889_v39, %v886_v37  ;;  %v891_v7 = vadd.f32 %v889_v39, %v887_v2  ;;  %v1336_v37 = vsub.f32 %v1332_v40, %v4191_v56  ;;  %v1352_v39 = vand.u32 2147483647, %v1340_v14 }
 0x3cc   : > { %v1368_v2 = vsub.f32 1.0, %v1356_v24  ;;  %v3757_v24 = vld [vmem:[#allocation6] sm:$0xff] }
 0x3cd   : > { %v1348_v55 = vand.u32 2147483647, %v1336_v37  ;;  %v1364_v50 = vsub.f32 1.0, %v1352_v39  ;;  %v1753_v11 = vsub.f32 %v1752_v3, %v3757_v24  ;;  %v3813_v3 = vld [vmem:[%s3340_s8 + $0x20] sm:$0xff] }
 0x3ce   : > { %v1380_v51 = vmax.f32 %v1368_v2, 0.0 }
 0x3cf   : > { %v1360_v0 = vsub.f32 1.0, %v1348_v55  ;;  %v1376_v12 = vmax.f32 %v1364_v50, 0.0  ;;  %v3818_v55 = vld [vmem:[%s3340_s8 + $0x28] sm:$0xff] }
 0x3d1   : > { %v1372_v39 = vmax.f32 %v1360_v0, 0.0 }
 0x450   : > { %v1281_v50 = vpop.xlane.xlu1 %1280 }
 0x46d   : > { %v1244_v45 = vpop.f32.mrf.mxu0 }
 0x46e   : > { %v1249_v47 = vadd.f32 %v1244_v45, %v890_v44  ;;  %v1335_v44 = vsub.f32 %v1332_v40, %v4192_v57  ;;  %v1755_v57 = vand.u32 2147483647, %v1753_v11 }
 0x46f   : > { %v1246_v58 = vpop.f32.mrf.mxu0 }
 0x470   : > { %2540 = vst [vmem:[%s3592_s0 + $0x10] sm:$0x3f] %v1249_v47  ;;  %v1250_v21 = vadd.f32 %v1246_v58, %v891_v7  ;;  %v1351_v7 = vand.u32 2147483647, %v1339_v15  ;;  %v1367_v47 = vsub.f32 1.0, %v1355_v59  ;;  %v4193_v58 = vld [vmem:[#allocation23_spill] sm:$0xff] }
 0x471   : > { %v2866_v20 = vpop.f32.mrf.mxu0  ;;  %v1347_v25 = vand.u32 2147483647, %v1335_v44 }
 0x472   : > { %2541 = vst [vmem:[%s3592_s0 + $0x18] sm:$0x3f] %v1250_v21  ;;  %v1334_v21 = vsub.f32 %v1332_v40, %v4193_v58  ;;  %v1363_v27 = vsub.f32 1.0, %v1351_v7  ;;  %v1379_v1 = vmax.f32 %v1367_v47, 0.0 }
 0x473   : > { %v1447_v5 = vpop.f32.mrf.mxu0  ;;  %v1359_v15 = vsub.f32 1.0, %v1347_v25 }
 0x474   : > { %2743 = vmatmul.mubr.msk.f32.vlgmr.msra.gmra.mxu0 %vm499_vm0, %v1447_v5  ;;  %v1366_v5 = vsub.f32 1.0, %v1354_v33  ;;  %v1346_v6 = vand.u32 2147483647, %v1334_v21  ;;  %v1375_v59 = vmax.f32 %v1363_v27, 0.0 }
 0x475   : > { %1564 = vmatprep.mubr.f32.mxu0 %v4177_v49  ;;  %v2869_v18 = vpop.f32.mrf.mxu0  ;;  %v1371_v44 = vmax.f32 %v1359_v15, 0.0 }
 0x476   : > { %v1378_v26 = vmax.f32 %v1366_v5, 0.0 }
 0x477   : > { %v1457_v19 = vpop.f32.mrf.mxu0 }
 0x478   : > { %2744 = vmatmul.mubr.msk.f32.gmra.mxu0 %vm499_vm0, %v2866_v20  ;;  %v1350_v20 = vand.u32 2147483647, %v1338_v52  ;;  %v1358_v52 = vsub.f32 1.0, %v1346_v6 }
 0x479   : > { %1570 = vmatprep.mubr.f32.mxu0 %v4177_v49  ;;  %v2872_v23 = vpop.f32.mrf.mxu0 }
 0x47a   : > { %v1362_v63 = vsub.f32 1.0, %v1350_v20  ;;  %v1370_v47 = vmax.f32 %v1358_v52, 0.0 }
 0x47b   : > { %v1467_v30 = vpop.f32.mrf.mxu0 }
 0x47c   : > { %2745 = vmatmul.mubr.msk.f32.gmra.mxu0 %vm499_vm0, %v1457_v19  ;;  %v1374_v33 = vmax.f32 %v1362_v63, 0.0  ;;  %v1313_v63 = vstv %s3636_s18 }
 0x47d   : > { %1576 = vmatprep.mubr.f32.mxu0 %v4177_v49 }
 0x480   : > { %2746 = vmatmul.mubr.msk.f32.gmra.mxu0 %vm499_vm0, %v2869_v18  ;;  %v4194_v18 = vld [vmem:[#allocation24_spill] sm:$0xff] }
 0x481   : > { %1582 = vmatprep.mubr.f32.mxu0 %v4177_v49  ;;  %v1333_v19 = vsub.f32 %v1332_v40, %v4194_v18 }
 0x483   : > { %v1345_v31 = vand.u32 2147483647, %v1333_v19 }
 0x484   : > { %2747 = vmatmul.mubr.msk.f32.gmra.mxu0 %vm499_vm0, %v1467_v30  ;;  %v1365_v30 = vsub.f32 1.0, %v1353_v53 }
 0x485   : > { %1588 = vmatprep.mubr.f32.mxu0 %v4177_v49  ;;  %v1357_v53 = vsub.f32 1.0, %v1345_v31  ;;  %v1314_v31 = vmul.f32 %v3578_v10, %v1313_v63  ;;  %v3893_v63 = vld [vmem:[%s4118_s4 + $0x50] sm:$0xff] }
 0x486   : > { %v1377_v32 = vmax.f32 %v1365_v30, 0.0  ;;  %v3804_v30 = vld [vmem:[%s4117_s3] sm:$0xff]  ;;  %4195 = vst [vmem:[#allocation12_spill] sm:$0xff] %v3893_v63 }
 0x487   : > { %v1369_v20 = vmax.f32 %v1357_v53, 0.0 }
 0x488   : > { %2748 = vmatmul.mubr.msk.f32.gmra.mxu0 %vm499_vm0, %v2872_v23  ;;  %v1349_v23 = vand.u32 2147483647, %v1337_v35  ;;  %v1756_v35 = vand.u32 2147483647, %v1754_v29 }
 0x489   : > { %2100 = vmatprep.mubr.f32.mxu0 %v4177_v49 }
 0x48a   : > { %v1361_v40 = vsub.f32 1.0, %v1349_v23  ;;  %v1758_v21 = vsub.f32 1.0, %v1756_v35  ;;  %v3798_v23 = vld [vmem:[%s4117_s3 + $0x8] sm:$0xff] }
 0x48c   : > { %v1373_v56 = vmax.f32 %v1361_v40, 0.0  ;;  %v1760_v19 = vmax.f32 %v1758_v21, 0.0  ;;  %v1317_v40 = vstv %s3720_s12  ;;  %s1740_s12 = sadd.s32 5, %s3725_s2 }
 0x48d   : > { %v1318_v0 = vmul.f32 %v3586_v54, %v1317_v40  ;;  %s3865_s20 = sld [smem:[#allocation2 + %s1740_s12]] }
 0x493   : > { %s1751_s17 = smul.f32 7.5, %s3865_s20 }
 0x534   : > { %v3722_v62 = vpop.f32.mrf.mxu0 }
 0x536   : > { %v3728_v46 = vpop.f32.mrf.mxu0 }
 0x538   : > { %v3731_v60 = vpop.f32.mrf.mxu0 }
 0x53a   : > { %v3733_v13 = vpop.f32.mrf.mxu0 }
 0x53b   : > { %v1598_v18 = vmul.f32 %v3733_v13, %v1372_v39  ;;  %v3769_v13 = vld [vmem:[%s3340_s8] sm:$0xff] }
 0x53c   : > { %v3738_v38 = vpop.f32.mrf.mxu0 }
 0x53d   : > { %v1599_v5 = vmul.f32 %v3738_v38, %v1373_v56 }
 0x53e   : > { %v3742_v22 = vpop.f32.mrf.mxu0 }
 0x53f   : > { %v1600_v58 = vmul.f32 %v3742_v22, %v1374_v33  ;;  %v1595_v22 = vmul.f32 %v3722_v62, %v1369_v20  ;;  %v3774_v62 = vld [vmem:[%s3340_s8 + $0x8] sm:$0xff] }
 0x540   : > { %v1578_v16 = vpop.f32.mrf.mxu0 }
 0x541   : > { %v1601_v7 = vmul.f32 %v1578_v16, %v1375_v59  ;;  %v1596_v16 = vmul.f32 %v3728_v46, %v1370_v47  ;;  %v3785_v46 = vld [vmem:[%s3340_s8 + $0x10] sm:$0xff] }
 0x542   : > { %v1580_v36 = vpop.f32.mrf.mxu0 }
 0x543   : > { %v1602_v2 = vmul.f32 %v1580_v36, %v1376_v12  ;;  %v1597_v36 = vmul.f32 %v3731_v60, %v1371_v44  ;;  %v3792_v60 = vld [vmem:[%s4117_s3 + $0x10] sm:$0xff]  ;;  %v3853_v44 = vld [vmem:[#allocation5 + $0x1] ss:$2 sm:$0x3] }
 0x544   : > { %v1584_v45 = vpop.f32.mrf.mxu0 }
 0x545   : > { %v1603_v37 = vmul.f32 %v1584_v45, %v1377_v32  ;;  %v1757_v45 = vsub.f32 1.0, %v1755_v57 }
 0x546   : > { %v1586_v9 = vpop.f32.mrf.mxu0 }
 0x547   : > { %v1604_v34 = vmul.f32 %v1586_v9, %v1378_v26  ;;  %v1759_v38 = vmax.f32 %v1757_v45, 0.0  ;;  %v3808_v9 = vld [vmem:[%s3340_s8 + $0x18] sm:$0xff]  ;;  %s1683_s8 = sadd.s32 1, %s3725_s2 }
 0x548   : > { %v1590_v43 = vpop.f32.mrf.mxu0  ;;  %s1684_s18 = sld [smem:[#allocation2 + %s1683_s8]]  ;;  %s2179_s8 = smul.f32 7.5, %s3880_s15 }
 0x549   : > { %v1605_v17 = vmul.f32 %v1590_v43, %v1379_v1  ;;  %v1292_v1 = vstv %s1291_s22 }
 0x54a   : > { %v1592_v61 = vpop.f32.mrf.mxu0 }
 0x54b   : > { %v1606_v14 = vmul.f32 %v1592_v61, %v1380_v51  ;;  %v1286_v51 = vrot.slane %v1281_v50, %v3432_v41 }
 0x54d   : > { %1627 = vmatprep.subr.mxu1 %v1606_v14  ;;  %3002 = vrcp.f32 %v1286_v51 }
 0x54e   : > { %1628 = vmatpush1.msra.mxu1 %v1605_v17  ;;  %v1688_v39 = vstv %s1684_s18  ;;  %s2169_s18 = sadd.s32 5, %s3870_s1 }
 0x54f   : > { %1629 = vmatprep.subr.mxu1 %v1604_v34  ;;  %s4031_s12 = sld [smem:[#allocation2 + %s2169_s18]] }
 0x550   : > { %1630 = vmatpush1.msra.mxu1 %v1603_v37  ;;  %v1685_v37 = vstv %s1682_s16 }
 0x551   : > { %1631 = vmatprep.subr.mxu1 %v1602_v2  ;;  %v3850_v2 = vld [vmem:[#allocation5] ss:$2 sm:$0x3] }
 0x552   : > { %1632 = vmatpush1.msra.mxu1 %v1601_v7  ;;  %v1686_v57 = vsub.f32 %v3850_v2, %v1685_v37  ;;  %v1689_v7 = vsub.f32 %v3853_v44, %v1688_v39  ;;  %v3940_v37 = vld [vmem:[%s4118_s4 + $0x18] sm:$0xff] }
 0x553   : > { %1633 = vmatprep.subr.mxu1 %v1600_v58  ;;  %4202 = vst [vmem:[#allocation19_spill] sm:$0xff] %v3940_v37 }
 0x554   : > { %1634 = vmatpush1.msra.mxu1 %v1599_v5  ;;  %v1687_v47 = vmul.f32 %v1686_v57, %v1686_v57  ;;  %v1690_v58 = vmul.f32 %v1689_v7, %v1689_v7 }
 0x555   : > { %1635 = vmatprep.subr.mxu1 %v1598_v18 }
 0x556   : > { %1636 = vmatpush1.msra.mxu1 %v1597_v36  ;;  %v1691_v21 = vadd.f32 %v1690_v58, %v1687_v47  ;;  %v3946_v47 = vld [vmem:[%s4118_s4 + $0x10] sm:$0xff] }
 0x557   : > { %1637 = vmatprep.subr.mxu1 %v1596_v16  ;;  %4203 = vst [vmem:[#allocation20_spill] sm:$0xff] %v3946_v47 }
 0x558   : > { %1638 = vmatpush1.msra.mxu1 %v1595_v22  ;;  %v1692_v20 = vmul.f32 -50.0, %v1691_v21 }
 0x559   : > { %2749 = vmatmul.mubr.msk.f32.vlgmr.msra.gmra.mxu1 %vm744_vm2, %v3551_v4  ;;  %2873 = vmatprep.subr.mxu1 %v1760_v19  ;;  %v3781_v4 = vld [vmem:[%s4117_s3 + $0x18] sm:$0xff] }
 0x55a   : > { %2874 = vmatpush3.msra.mxu1 %v1760_v19  ;;  %2877 = vmatprep.mubr.msk.f32.mxu1 %vm499_vm0, %v3769_v13  ;;  %v3003_v25 = vpop.eup %3002  ;;  %v1693_v5 = vmul.f32 1.442695, %v1692_v20 }
 0x55b   : > { %2875 = vmatprep.subr.mxu1 %v1759_v38  ;;  %v1289_v27 = vmul.f32 %v3003_v25, %v3711_v48  ;;  %v1761_v25 = vstv %s1751_s17  ;;  %s2180_s17 = smul.f32 7.5, %s4031_s12 }
 0x55c   : > { %2876 = vmatpush3.msra.mxu1 %v1759_v38  ;;  %3004 = vpow2.f32 %v1693_v5  ;;  %v1765_v39 = vsub.f32 %v1761_v25, %v3940_v37  ;;  %v1764_v58 = vsub.f32 %v1761_v25, %v3946_v47 }
 0x55d   : > { %2878 = vmatmul.mubr.msk.f32.vlgmr.msra.gmra.mxu1 %vm499_vm0, %v3774_v62  ;;  %1951 = vmatprep.subr.mxu1 %v3781_v4  ;;  %v1293_v43 = vmul.f32 %v1292_v1, %v1289_v27  ;;  %v3885_v1 = vld [vmem:[%s4118_s4 + $0x58] sm:$0xff] }
 0x55e   : > { %2880 = vmatprep.mubr.msk.f32.mxu1 %vm499_vm0, %v3785_v46  ;;  %1952 = vmatpush1.msra.mxu1 %v3792_v60  ;;  %v1776_v47 = vand.u32 2147483647, %v1764_v58 }
 0x55f   : > { %1953 = vmatprep.subr.mxu1 %v3798_v23  ;;  %v1298_v6 = vrot.slane %v1293_v43, %v3432_v41  ;;  %v1302_v26 = vrot.slane %v1293_v43, %v3435_v42  ;;  %v1773_v43 = vsub.f32 %v1761_v25, %v3885_v1 }
 0x560   : > { %1954 = vmatpush1.msra.mxu1 %v3804_v30 }
 0x561   : > { %2881 = vmatmul.mubr.msk.f32.gmra.mxu1 %vm499_vm0, %v3808_v9  ;;  %v1305_v29 = vmul.f32 %v3575_v8, %v1298_v6  ;;  %v1306_v32 = vmul.f32 %v3575_v8, %v1302_v26  ;;  %v1772_v26 = vsub.f32 %v1761_v25, %v3893_v63 }
 0x562   : > { %2883 = vmatprep.mubr.msk.f32.mxu1 %vm499_vm0, %v3813_v3 }
 0x563   : > { %v1315_v61 = vadd.f32 %v1314_v31, %v1305_v29  ;;  %v1316_v48 = vadd.f32 %v1314_v31, %v1306_v32  ;;  %v3899_v29 = vld [vmem:[%s4118_s4 + $0x48] sm:$0xff]  ;;  %v3907_v32 = vld [vmem:[%s4118_s4 + $0x40] sm:$0xff] }
 0x564   : > { %4196 = vst [vmem:[#allocation13_spill] sm:$0xff] %v3899_v29  ;;  %v1771_v31 = vsub.f32 %v1761_v25, %v3899_v29  ;;  %4197 = vst [vmem:[#allocation14_spill] sm:$0xff] %v3907_v32 }
 0x565   : > { %2884 = vmatmul.mubr.msk.f32.gmra.mxu1 %vm499_vm0, %v3818_v55  ;;  %v1319_v12 = vadd.f32 %v1318_v0, %v1315_v61  ;;  %v1320_v14 = vadd.f32 %v1318_v0, %v1316_v48  ;;  %v1770_v61 = vsub.f32 %v1761_v25, %v3907_v32  ;;  %v3913_v0 = vld [vmem:[%s4118_s4 + $0x38] sm:$0xff] }
 0x566   : > { %1987 = vmatprep.mubr.f32.mxu1 %v4177_v49  ;;  %4198 = vst [vmem:[#allocation15_spill] sm:$0xff] %v3913_v0  ;;  %v1769_v48 = vsub.f32 %v1761_v25, %v3913_v0 }
 0x568   : > { %v1781_v57 = vand.u32 2147483647, %v1769_v48  ;;  %v2181_v48 = vstv %s2179_s8  ;;  %s1719_s8 = sadd.s32 6, %s3725_s2  ;;  %s2112_s2 = sadd.s32 1, %s3870_s1 }
 0x569   : > { %v3856_v18 = vpop.eup %3004  ;;  %s1720_s16 = sld [smem:[#allocation2 + %s1719_s8]] }
 0x56a   : > { %v1699_v45 = vrot.slane %v3856_v18, %v3432_v41  ;;  %v1703_v36 = vrot.slane %v3856_v18, %v3435_v42 }
 0x56c   : > { %v1706_v16 = vsel %vm385_vm1, %v1699_v45, 0.0  ;;  %v1707_v19 = vsel %vm385_vm1, %v1703_v36, 0.0  ;;  %v3952_v45 = vld [vmem:[%s4118_s4 + $0x8] sm:$0xff] }
 0x56d   : > { %v1708_v22 = vadd.f32 %v1707_v19, %v1706_v16  ;;  %4204 = vst [vmem:[#allocation21_spill] sm:$0xff] %v3952_v45  ;;  %v1763_v36 = vsub.f32 %v1761_v25, %v3952_v45 }
 0x56f   : > { %1709 = vadd.xlane.f32.xlu1 %v1708_v22  ;;  %v3958_v22 = vld [vmem:[%s4118_s4] sm:$0xff] }
 0x570   : > { %4205 = vst [vmem:[#allocation22_spill] sm:$0xff] %v3958_v22 }
 0x619   : > { %v1673_v11 = vpop.f32.mrf.mxu1 }
 0x61a   : > { %v1678_v15 = vadd.f32 %v1673_v11, %v1319_v12  ;;  %v1785_v12 = vand.u32 2147483647, %v1773_v43  ;;  %v1762_v43 = vsub.f32 %v1761_v25, %v3958_v22 }
 0x61b   : > { %v1675_v59 = vpop.f32.mrf.mxu1 }
 0x61c   : > { %2542 = vst [vmem:[%s3592_s0 + $0x20] sm:$0x3f] %v1678_v15  ;;  %v1679_v17 = vadd.f32 %v1675_v59, %v1320_v14  ;;  %v3919_v14 = vld [vmem:[%s4118_s4 + $0x30] sm:$0xff]  ;;  %v1784_v59 = vand.u32 2147483647, %v1772_v26  ;;  %v1797_v7 = vsub.f32 1.0, %v1785_v12 }
 0x61d   : > { %v2879_v52 = vpop.f32.mrf.mxu1  ;;  %4199 = vst [vmem:[#allocation16_spill] sm:$0xff] %v3919_v14  ;;  %v1768_v11 = vsub.f32 %v1761_v25, %v3919_v14  ;;  %v1777_v12 = vand.u32 2147483647, %v1765_v39  ;;  %v2183_v14 = vsub.f32 %v2181_v48, %v3754_v28  ;;  %v1774_v0 = vand.u32 2147483647, %v1762_v43 }
 0x61e   : > { %2543 = vst [vmem:[%s3592_s0 + $0x28] sm:$0x3f] %v1679_v17  ;;  %v3927_v17 = vld [vmem:[%s4118_s4 + $0x28] sm:$0xff]  ;;  %v1796_v5 = vsub.f32 1.0, %v1784_v59  ;;  %v1809_v59 = vmax.f32 %v1797_v7, 0.0  ;;  %v2182_v39 = vsub.f32 %v2181_v48, %v3757_v24 }
 0x61f   : > { %v1876_v33 = vpop.f32.mrf.mxu1  ;;  %4200 = vst [vmem:[#allocation17_spill] sm:$0xff] %v3927_v17  ;;  %v1780_v21 = vand.u32 2147483647, %v1768_v11  ;;  %v1793_v11 = vsub.f32 1.0, %v1781_v57  ;;  %v1788_v57 = vsub.f32 1.0, %v1776_v47 }
 0x620   : > { %2757 = vmatmul.mubr.msk.f32.vlgmr.msra.gmra.mxu1 %vm499_vm0, %v1876_v33  ;;  %v1783_v33 = vand.u32 2147483647, %v1771_v31 }
 0x621   : > { %1993 = vmatprep.mubr.f32.mxu1 %v4177_v49  ;;  %v2882_v34 = vpop.f32.mrf.mxu1  ;;  %v1792_v37 = vsub.f32 1.0, %v1780_v21 }
 0x622   : > { %v1795_v19 = vsub.f32 1.0, %v1783_v33 }
 0x623   : > { %v1886_v35 = vpop.f32.mrf.mxu1  ;;  %v1804_v7 = vmax.f32 %v1792_v37, 0.0 }
 0x624   : > { %2758 = vmatmul.mubr.msk.f32.gmra.mxu1 %vm499_vm0, %v2879_v52  ;;  %v1767_v52 = vsub.f32 %v1761_v25, %v3927_v17  ;;  %v1807_v17 = vmax.f32 %v1795_v19, 0.0 }
 0x625   : > { %1999 = vmatprep.mubr.f32.mxu1 %v4177_v49  ;;  %v2885_v53 = vpop.f32.mrf.mxu1 }
 0x626   : > { %v1779_v16 = vand.u32 2147483647, %v1767_v52  ;;  %v1775_v52 = vand.u32 2147483647, %v1763_v36  ;;  %v2185_v36 = vand.u32 2147483647, %v2183_v14 }
 0x627   : > { %v1896_v56 = vpop.f32.mrf.mxu1 }
 0x628   : > { %2759 = vmatmul.mubr.msk.f32.gmra.mxu1 %vm499_vm0, %v1886_v35  ;;  %v1791_v33 = vsub.f32 1.0, %v1779_v16  ;;  %v1787_v21 = vsub.f32 1.0, %v1775_v52  ;;  %v1786_v16 = vsub.f32 1.0, %v1774_v0  ;;  %v2187_v37 = vsub.f32 1.0, %v2185_v36 }
 0x629   : > { %2005 = vmatprep.mubr.f32.mxu1 %v4177_v49 }
 0x62a   : > { %v1799_v24 = vmax.f32 %v1787_v21, 0.0 }
 0x62c   : > { %2760 = vmatmul.mubr.msk.f32.gmra.mxu1 %vm499_vm0, %v2882_v34  ;;  %v3933_v34 = vld [vmem:[%s4118_s4 + $0x20] sm:$0xff] }
 0x62d   : > { %2011 = vmatprep.mubr.f32.mxu1 %v4177_v49  ;;  %4201 = vst [vmem:[#allocation18_spill] sm:$0xff] %v3933_v34  ;;  %v1766_v35 = vsub.f32 %v1761_v25, %v3933_v34  ;;  %v1808_v34 = vmax.f32 %v1796_v5, 0.0  ;;  %v1803_v5 = vmax.f32 %v1791_v33, 0.0 }
 0x62f   : > { %v1778_v26 = vand.u32 2147483647, %v1766_v35  ;;  %v1789_v35 = vsub.f32 1.0, %v1777_v12  ;;  %v1800_v12 = vmax.f32 %v1788_v57, 0.0 }
 0x630   : > { %2761 = vmatmul.mubr.msk.f32.gmra.mxu1 %vm499_vm0, %v1896_v56  ;;  %v1782_v56 = vand.u32 2147483647, %v1770_v61 }
 0x631   : > { %2017 = vmatprep.mubr.f32.mxu1 %v4177_v49  ;;  %v1790_v32 = vsub.f32 1.0, %v1778_v26  ;;  %v1801_v43 = vmax.f32 %v1789_v35, 0.0 }
 0x632   : > { %v1794_v31 = vsub.f32 1.0, %v1782_v56  ;;  %v1805_v56 = vmax.f32 %v1793_v11, 0.0 }
 0x633   : > { %v1802_v19 = vmax.f32 %v1790_v32, 0.0 }
 0x634   : > { %2762 = vmatmul.mubr.msk.f32.gmra.mxu1 %vm499_vm0, %v2885_v53  ;;  %v1806_v29 = vmax.f32 %v1794_v31, 0.0  ;;  %v2184_v31 = vand.u32 2147483647, %v2182_v39 }
 0x635   : > { %2529 = vmatprep.mubr.f32.mxu1 %v4177_v49 }
 0x636   : > { %v2186_v32 = vsub.f32 1.0, %v2184_v31 }
 0x6e0   : > { %v3867_v38 = vpop.f32.mrf.mxu1 }
 0x6e2   : > { %v3873_v50 = vpop.f32.mrf.mxu1 }
 0x6e3   : > { %v2025_v0 = vmul.f32 %v3873_v50, %v1799_v24  ;;  %v1746_v50 = vstv %s3865_s20  ;;  %s2113_s20 = sld [smem:[#allocation2 + %s2112_s2]] }
 0x6e4   : > { %v3876_v51 = vpop.f32.mrf.mxu1  ;;  %v1747_v47 = vmul.f32 %v3586_v54, %v1746_v50 }
 0x6e6   : > { %v3878_v27 = vpop.f32.mrf.mxu1 }
 0x6e8   : > { %v3888_v6 = vpop.f32.mrf.mxu1 }
 0x6e9   : > { %v2028_v14 = vmul.f32 %v3888_v6, %v1802_v19  ;;  %v3973_v6 = vld [vmem:[%s4119_s5] sm:$0x3f] }
 0x6ea   : > { %v3902_v40 = vpop.f32.mrf.mxu1 }
 0x6ec   : > { %v3922_v15 = vpop.f32.mrf.mxu1 }
 0x6ed   : > { %v2030_v11 = vmul.f32 %v3922_v15, %v1804_v7  ;;  %v2189_v15 = vmax.f32 %v2187_v37, 0.0  ;;  %v2117_v7 = vstv %s2113_s20 }
 0x6ee   : > { %v2009_v53 = vpop.f32.mrf.mxu1  ;;  %v2118_v21 = vsub.f32 %v3853_v44, %v2117_v7 }
 0x6ef   : > { %v2031_v26 = vmul.f32 %v2009_v53, %v1805_v56 }
 0x6f0   : > { %v2013_v20 = vpop.f32.mrf.mxu1  ;;  %v2119_v36 = vmul.f32 %v2118_v21, %v2118_v21 }
 0x6f1   : > { %v2032_v28 = vmul.f32 %v2013_v20, %v1806_v29  ;;  %v2027_v29 = vmul.f32 %v3878_v27, %v1801_v43 }
 0x6f2   : > { %v2015_v61 = vpop.f32.mrf.mxu1 }
 0x6f3   : > { %v2033_v63 = vmul.f32 %v2015_v61, %v1807_v17  ;;  %v1798_v17 = vmax.f32 %v1786_v16, 0.0 }
 0x6f4   : > { %v2019_v45 = vpop.f32.mrf.mxu1 }
 0x6f5   : > { %v2034_v58 = vmul.f32 %v2019_v45, %v1808_v34  ;;  %v2029_v34 = vmul.f32 %v3902_v40, %v1803_v5  ;;  %v2024_v53 = vmul.f32 %v3867_v38, %v1798_v17  ;;  %v2188_v40 = vmax.f32 %v2186_v32, 0.0 }
 0x6f6   : > { %v2021_v25 = vpop.f32.mrf.mxu1 }
 0x6f7   : > { %v2035_v22 = vmul.f32 %v2021_v25, %v1809_v59 }
 0x6f9   : > { %2056 = vmatprep.subr.mxu0 %v2035_v22 }
 0x6fa   : > { %2057 = vmatpush1.msra.mxu0 %v2034_v58 }
 0x6fb   : > { %2058 = vmatprep.subr.mxu0 %v2033_v63  ;;  %v2026_v63 = vmul.f32 %v3876_v51, %v1800_v12 }
 0x6fc   : > { %2059 = vmatpush1.msra.mxu0 %v2032_v28 }
 0x6fd   : > { %2060 = vmatprep.subr.mxu0 %v2031_v26 }
 0x6fe   : > { %2061 = vmatpush1.msra.mxu0 %v2030_v11 }
 0x6ff   : > { %2062 = vmatprep.subr.mxu0 %v2029_v34  ;;  %v2190_v34 = vstv %s2180_s17 }
 0x700   : > { %2063 = vmatpush1.msra.mxu0 %v2028_v14  ;;  %v2202_v17 = vsub.f32 %v2190_v34, %v3885_v1  ;;  %v4212_v1 = vld [vmem:[#allocation18_spill] sm:$0xff] }
 0x701   : > { %2064 = vmatprep.subr.mxu0 %v2027_v29  ;;  %v4206_v29 = vld [vmem:[#allocation12_spill] sm:$0xff] }
 0x702   : > { %2065 = vmatpush1.msra.mxu0 %v2026_v63  ;;  %v2201_v32 = vsub.f32 %v2190_v34, %v4206_v29  ;;  %v4207_v63 = vld [vmem:[#allocation13_spill] sm:$0xff] }
 0x703   : > { %2066 = vmatprep.subr.mxu0 %v2025_v0  ;;  %v2200_v0 = vsub.f32 %v2190_v34, %v4207_v63 }
 0x704   : > { %2067 = vmatpush1.msra.mxu0 %v2024_v53  ;;  %v4208_v53 = vld [vmem:[#allocation14_spill] sm:$0xff] }
 0x705   : > { %2763 = vmatmul.mubr.msk.f32.vlgmr.msra.gmra.mxu0 %vm744_vm2, %v3973_v6  ;;  %2886 = vmatprep.subr.mxu0 %v2189_v15 }
 0x706   : > { %2887 = vmatpush3.msra.mxu0 %v2189_v15  ;;  %2890 = vmatprep.mubr.msk.f32.mxu0 %vm499_vm0, %v3769_v13  ;;  %v1710_v13 = vpop.xlane.xlu1 %1709 }
 0x707   : > { %2888 = vmatprep.subr.mxu0 %v2188_v40 }
 0x708   : > { %2889 = vmatpush3.msra.mxu0 %v2188_v40  ;;  %v2199_v40 = vsub.f32 %v2190_v34, %v4208_v53 }
 0x709   : > { %2891 = vmatmul.mubr.msk.f32.vlgmr.msra.gmra.mxu0 %vm499_vm0, %v3774_v62  ;;  %2380 = vmatprep.subr.mxu0 %v3781_v4  ;;  %v1715_v62 = vrot.slane %v1710_v13, %v3432_v41  ;;  %v4209_v13 = vld [vmem:[#allocation15_spill] sm:$0xff] }
 0x70a   : > { %2893 = vmatprep.mubr.msk.f32.mxu0 %vm499_vm0, %v3785_v46  ;;  %2381 = vmatpush1.msra.mxu0 %v3792_v60  ;;  %v1721_v60 = vstv %s1720_s16 }
 0x70b   : > { %2382 = vmatprep.subr.mxu0 %v3798_v23  ;;  %3006 = vrcp.f32 %v1715_v62  ;;  %v2198_v62 = vsub.f32 %v2190_v34, %v4209_v13 }
 0x70c   : > { %2383 = vmatpush1.msra.mxu0 %v3804_v30 }
 0x70d   : > { %2894 = vmatmul.mubr.msk.f32.gmra.mxu0 %vm499_vm0, %v3808_v9  ;;  %v1742_v9 = vstv %s3735_s14  ;;  %s2111_s14 = sld [smem:[#allocation2 + %s3870_s1]]  ;;  %s2778_s1 = sshll.u32 (%p3263_p5), %s3152_s26, 1 }
 0x70e   : > { %2896 = vmatprep.mubr.msk.f32.mxu0 %vm499_vm0, %v3813_v3  ;;  %v1743_v38 = vmul.f32 %v3578_v10, %v1742_v9  ;;  %v4211_v9 = vld [vmem:[#allocation17_spill] sm:$0xff] }
 0x711   : > { %2897 = vmatmul.mubr.msk.f32.gmra.mxu0 %vm499_vm0, %v3818_v55 }
 0x712   : > { %2416 = vmatprep.mubr.f32.mxu0 %v4177_v49 }
 0x713   : > { %v2114_v57 = vstv %s2111_s14 }
 0x714   : > { %v2115_v58 = vsub.f32 %v3850_v2, %v2114_v57 }
 0x716   : > { %v2116_v5 = vmul.f32 %v2115_v58, %v2115_v58 }
 0x718   : > { %v3007_v4 = vpop.eup %3006  ;;  %v2120_v16 = vadd.f32 %v2119_v36, %v2116_v5 }
 0x719   : > { %v1718_v46 = vmul.f32 %v3007_v4, %v3856_v18  ;;  %v2214_v4 = vand.u32 2147483647, %v2202_v17 }
 0x71a   : > { %v2121_v19 = vmul.f32 -50.0, %v2120_v16 }
 0x71b   : > { %v1722_v23 = vmul.f32 %v1721_v60, %v1718_v46  ;;  %v4210_v46 = vld [vmem:[#allocation16_spill] sm:$0xff] }
 0x71c   : > { %v2122_v28 = vmul.f32 1.442695, %v2121_v19  ;;  %v2197_v60 = vsub.f32 %v2190_v34, %v4210_v46 }
 0x71d   : > { %v1727_v30 = vrot.slane %v1722_v23, %v3432_v41  ;;  %v1731_v3 = vrot.slane %v1722_v23, %v3435_v42 }
 0x71e   : > { %3008 = vpow2.f32 %v2122_v28 }
 0x71f   : > { %v1734_v55 = vmul.f32 %v3575_v8, %v1727_v30  ;;  %v1735_v51 = vmul.f32 %v3575_v8, %v1731_v3  ;;  %v2213_v30 = vand.u32 2147483647, %v2201_v32  ;;  %v2196_v3 = vsub.f32 %v2190_v34, %v4211_v9 }
 0x721   : > { %v1744_v27 = vadd.f32 %v1743_v38, %v1734_v55  ;;  %v1745_v18 = vadd.f32 %v1743_v38, %v1735_v51  ;;  %v2212_v55 = vand.u32 2147483647, %v2200_v0  ;;  %v2195_v38 = vsub.f32 %v2190_v34, %v4212_v1 }
 0x722   : > { %v2211_v51 = vand.u32 2147483647, %v2199_v40 }
 0x723   : > { %v1748_v20 = vadd.f32 %v1747_v47, %v1744_v27  ;;  %v1749_v45 = vadd.f32 %v1747_v47, %v1745_v18  ;;  %v4213_v27 = vld [vmem:[#allocation19_spill] sm:$0xff]  ;;  %v2210_v18 = vand.u32 2147483647, %v2198_v62  ;;  %v2207_v57 = vand.u32 2147483647, %v2195_v38 }
 0x724   : > { %v2194_v47 = vsub.f32 %v2190_v34, %v4213_v27  ;;  %v2223_v7 = vsub.f32 1.0, %v2211_v51 }
 0x725   : > { %v2222_v5 = vsub.f32 1.0, %v2210_v18  ;;  %v2219_v17 = vsub.f32 1.0, %v2207_v57 }
 0x726   : > { %v2206_v21 = vand.u32 2147483647, %v2194_v47  ;;  %v2235_v29 = vmax.f32 %v2223_v7, 0.0 }
 0x727   : > { %v2234_v0 = vmax.f32 %v2222_v5, 0.0  ;;  %v2582_v5 = vld [vmem:[%s3592_s0 + $0x28] sm:$0xff] (%p3263_p5) }
 0x728   : > { %v2218_v63 = vsub.f32 1.0, %v2206_v21  ;;  %v2580_v21 = vld [vmem:[%s3592_s0 + $0x20] sm:$0xff] (%p3263_p5) }
 0x72b   : > { %v4022_v43 = vpop.eup %3008 }
 0x72c   : > { %v2132_v26 = vrot.slane %v4022_v43, %v3435_v42 }
 0x72e   : > { %v2136_v2 = vsel %vm385_vm1, %v2132_v26, 0.0 }
 0x7c5   : > { %v2102_v22 = vpop.f32.mrf.mxu0 }
 0x7c6   : > { %v2107_v61 = vadd.f32 %v2102_v22, %v1748_v20  ;;  %v2226_v20 = vsub.f32 1.0, %v2214_v4 }
 0x7c7   : > { %v2104_v48 = vpop.f32.mrf.mxu0 }
 0x7c8   : > { %2544 = vst [vmem:[%s3592_s0 + $0x30] sm:$0x3f] %v2107_v61  ;;  %v2108_v59 = vadd.f32 %v2104_v48, %v1749_v45  ;;  %v4214_v45 = vld [vmem:[#allocation20_spill] sm:$0xff]  ;;  %v2209_v61 = vand.u32 2147483647, %v2197_v60  ;;  %v2238_v36 = vmax.f32 %v2226_v20, 0.0 }
 0x7c9   : > { %v2892_v52 = vpop.f32.mrf.mxu0  ;;  %v2193_v22 = vsub.f32 %v2190_v34, %v4214_v45 }
 0x7ca   : > { %2545 = vst [vmem:[%s3592_s0 + $0x38] sm:$0x3f] %v2108_v59  ;;  %v2225_v59 = vsub.f32 1.0, %v2213_v30  ;;  %v2221_v19 = vsub.f32 1.0, %v2209_v61  ;;  %v2231_v30 = vmax.f32 %v2219_v17, 0.0  ;;  %v2171_v61 = vstv %s3880_s15  ;;  %s2901_s15 = smul.u32 (%p3263_p5), 30, %s3156_s27 }
 0x7cb   : > { %v2305_v33 = vpop.f32.mrf.mxu0  ;;  %v2205_v16 = vand.u32 2147483647, %v2193_v22 }
 0x7cc   : > { %2771 = vmatmul.mubr.msk.f32.vlgmr.msra.gmra.mxu0 %vm499_vm0, %v2305_v33  ;;  %v2237_v28 = vmax.f32 %v2225_v59, 0.0  ;;  %v2233_v40 = vmax.f32 %v2221_v19, 0.0  ;;  %v2172_v59 = vmul.f32 %v3578_v10, %v2171_v61  ;;  %v2576_v10 = vld [vmem:[%s3592_s0 + $0x10] sm:$0xff] (%p3263_p5)  ;;  %s2557_s13 = sadd.s32 (%p3263_p5), %s2901_s15, %s2778_s1 }
 0x7cd   : > { %2422 = vmatprep.mubr.f32.mxu0 %v4177_v49  ;;  %v2895_v25 = vpop.f32.mrf.mxu0  ;;  %v2217_v53 = vsub.f32 1.0, %v2205_v16  ;;  %s2779_s21 = sshll.u32 (%p3263_p5), %s2557_s13, 3 }
 0x7ce   : > { %s2559_s22 = scalar_lea.vmem (%p3263_p5), %s4121_s7, %s2779_s21 }
 0x7cf   : > { %v2315_v35 = vpop.f32.mrf.mxu0  ;;  %v2229_v1 = vmax.f32 %v2217_v53, 0.0  ;;  %2577 = vst [vmem:[%s2559_s22 + $0x30] sm:$0xff] (%p3263_p5), %v2576_v10  ;;  %2581 = vst [vmem:[%s2559_s22 + $0x60] sm:$0xff] (%p3263_p5), %v2580_v21 }
 0x7d0   : > { %2772 = vmatmul.mubr.msk.f32.gmra.mxu0 %vm499_vm0, %v2892_v52  ;;  %v4215_v52 = vld [vmem:[#allocation21_spill] sm:$0xff]  ;;  %2583 = vst [vmem:[%s2559_s22 + $0x68] sm:$0xff] (%p3263_p5), %v2582_v5 }
 0x7d1   : > { %2428 = vmatprep.mubr.f32.mxu0 %v4177_v49  ;;  %v2898_v56 = vpop.f32.mrf.mxu0  ;;  %v2192_v33 = vsub.f32 %v2190_v34, %v4215_v52  ;;  %v2175_v52 = vstv %s4031_s12  ;;  %v2586_v16 = vld [vmem:[%s3592_s0 + $0x38] sm:$0xff] (%p3263_p5) }
 0x7d2   : > { %2587 = vst [vmem:[%s2559_s22 + $0x98] sm:$0xff] (%p3263_p5), %v2586_v16 }
 0x7d3   : > { %v2325_v39 = vpop.f32.mrf.mxu0  ;;  %v2204_v26 = vand.u32 2147483647, %v2192_v33 }
 0x7d4   : > { %2773 = vmatmul.mubr.msk.f32.gmra.mxu0 %vm499_vm0, %v2315_v35  ;;  %v2224_v35 = vsub.f32 1.0, %v2212_v55 }
 0x7d5   : > { %2434 = vmatprep.mubr.f32.mxu0 %v4177_v49  ;;  %v2216_v62 = vsub.f32 1.0, %v2204_v26 }
 0x7d7   : > { %v2228_v51 = vmax.f32 %v2216_v62, 0.0 }
 0x7d8   : > { %2774 = vmatmul.mubr.msk.f32.gmra.mxu0 %vm499_vm0, %v2895_v25  ;;  %v2208_v25 = vand.u32 2147483647, %v2196_v3  ;;  %v2230_v3 = vmax.f32 %v2218_v63, 0.0 }
 0x7d9   : > { %2440 = vmatprep.mubr.f32.mxu0 %v4177_v49 }
 0x7dc   : > { %2775 = vmatmul.mubr.msk.f32.gmra.mxu0 %vm499_vm0, %v2325_v39 }
 0x7dd   : > { %2446 = vmatprep.mubr.f32.mxu0 %v4177_v49  ;;  %v2128_v49 = vrot.slane %v4022_v43, %v3432_v41 }
 0x7df   : > { %v2135_v31 = vsel %vm385_vm1, %v2128_v49, 0.0 }
 0x7e0   : > { %2776 = vmatmul.mubr.msk.f32.gmra.mxu0 %vm499_vm0, %v2898_v56  ;;  %v2137_v12 = vadd.f32 %v2136_v2, %v2135_v31  ;;  %v4216_v56 = vld [vmem:[#allocation22_spill] sm:$0xff]  ;;  %v2220_v31 = vsub.f32 1.0, %v2208_v25  ;;  %v2236_v2 = vmax.f32 %v2224_v35, 0.0  ;;  %v2176_v35 = vmul.f32 %v3586_v54, %v2175_v52  ;;  %v2578_v54 = vld [vmem:[%s3592_s0 + $0x18] sm:$0xff] (%p3263_p5) }
 0x7e1   : > { %v2191_v39 = vsub.f32 %v2190_v34, %v4216_v56  ;;  %2579 = vst [vmem:[%s2559_s22 + $0x38] sm:$0xff] (%p3263_p5), %v2578_v54 }
 0x7e2   : > { %2138 = vadd.xlane.f32.xlu0 %v2137_v12  ;;  %v2232_v4 = vmax.f32 %v2220_v31, 0.0 }
 0x7e3   : > { %v2203_v12 = vand.u32 2147483647, %v2191_v39 }
 0x7e5   : > { %v2215_v60 = vsub.f32 1.0, %v2203_v12 }
 0x7e7   : > { %v2227_v47 = vmax.f32 %v2215_v60, 0.0 }
 0x88c   : > { %v4033_v44 = vpop.f32.mrf.mxu0 }
 0x88e   : > { %v4036_v11 = vpop.f32.mrf.mxu0 }
 0x890   : > { %v4038_v24 = vpop.f32.mrf.mxu0 }
 0x891   : > { %v2455_v45 = vmul.f32 %v4038_v24, %v2229_v1 }
 0x892   : > { %v4040_v37 = vpop.f32.mrf.mxu0 }
 0x893   : > { %v2456_v20 = vmul.f32 %v4040_v37, %v2230_v3 }
 0x894   : > { %v4043_v14 = vpop.f32.mrf.mxu0 }
 0x895   : > { %v2457_v18 = vmul.f32 %v4043_v14, %v2231_v30  ;;  %v2139_v14 = vpop.xlane.xlu0 %2138 }
 0x896   : > { %v2432_v15 = vpop.f32.mrf.mxu0  ;;  %v2144_v37 = vrot.slane %v2139_v14, %v3432_v41 }
 0x897   : > { %v2458_v27 = vmul.f32 %v2432_v15, %v2232_v4  ;;  %v2150_v15 = vstv %s2149_s6 }
 0x898   : > { %v2436_v23 = vpop.f32.mrf.mxu0  ;;  %3010 = vrcp.f32 %v2144_v37 }
 0x899   : > { %v2459_v38 = vmul.f32 %v2436_v23, %v2233_v40  ;;  %v2453_v23 = vmul.f32 %v4033_v44, %v2227_v47 }
 0x89a   : > { %v2438_v50 = vpop.f32.mrf.mxu0 }
 0x89b   : > { %v2460_v55 = vmul.f32 %v2438_v50, %v2234_v0  ;;  %v2454_v50 = vmul.f32 %v4036_v11, %v2228_v51 }
 0x89c   : > { %v2442_v48 = vpop.f32.mrf.mxu0 }
 0x89d   : > { %v2461_v9 = vmul.f32 %v2442_v48, %v2235_v29 }
 0x89e   : > { %v2444_v58 = vpop.f32.mrf.mxu0 }
 0x89f   : > { %v2462_v46 = vmul.f32 %v2444_v58, %v2236_v2 }
 0x8a0   : > { %v2448_v49 = vpop.f32.mrf.mxu0 }
 0x8a1   : > { %v2463_v13 = vmul.f32 %v2448_v49, %v2237_v28 }
 0x8a2   : > { %v2450_v32 = vpop.f32.mrf.mxu0 }
 0x8a3   : > { %v2464_v34 = vmul.f32 %v2450_v32, %v2238_v36  ;;  %v2584_v36 = vld [vmem:[%s3592_s0 + $0x30] sm:$0xff] (%p3263_p5) }
 0x8a4   : > { %2585 = vst [vmem:[%s2559_s22 + $0x90] sm:$0xff] (%p3263_p5), %v2584_v36 }
 0x8a5   : > { %2485 = vmatprep.subr.mxu1 %v2464_v34  ;;  %v3011_v24 = vpop.eup %3010 }
 0x8a6   : > { %2486 = vmatpush1.msra.mxu1 %v2463_v13  ;;  %v2147_v11 = vmul.f32 %v3011_v24, %v4022_v43 }
 0x8a7   : > { %2487 = vmatprep.subr.mxu1 %v2462_v46 }
 0x8a8   : > { %2488 = vmatpush1.msra.mxu1 %v2461_v9  ;;  %v2151_v22 = vmul.f32 %v2150_v15, %v2147_v11 }
 0x8a9   : > { %2489 = vmatprep.subr.mxu1 %v2460_v55 }
 0x8aa   : > { %2490 = vmatpush1.msra.mxu1 %v2459_v38  ;;  %v2156_v44 = vrot.slane %v2151_v22, %v3432_v41  ;;  %v2160_v48 = vrot.slane %v2151_v22, %v3435_v42  ;;  %v2572_v42 = vld [vmem:[%s3592_s0] sm:$0xff] (%p3263_p5) }
 0x8ab   : > { %2491 = vmatprep.subr.mxu1 %v2458_v27  ;;  %2573 = vst [vmem:[%s2559_s22] sm:$0xff] (%p3263_p5), %v2572_v42 }
 0x8ac   : > { %2492 = vmatpush1.msra.mxu1 %v2457_v18  ;;  %v2164_v33 = vmul.f32 %v3575_v8, %v2160_v48 }
 0x8ad   : > { %2493 = vmatprep.subr.mxu1 %v2456_v20 }
 0x8ae   : > { %2494 = vmatpush1.msra.mxu1 %v2455_v45  ;;  %v2174_v43 = vadd.f32 %v2172_v59, %v2164_v33 }
 0x8af   : > { %2495 = vmatprep.subr.mxu1 %v2454_v50 }
 0x8b0   : > { %2496 = vmatpush1.msra.mxu1 %v2453_v23  ;;  %v2178_v39 = vadd.f32 %v2176_v35, %v2174_v43 }
 0x8b1   : > { %2777 = vmatmul.mubr.msk.f32.vlgmr.msra.gmra.mxu1 %vm744_vm2, %v3973_v6  ;;  %v2163_v6 = vmul.f32 %v3575_v8, %v2156_v44  ;;  %v2574_v8 = vld [vmem:[%s3592_s0 + $0x8] sm:$0xff] (%p3263_p5) }
 0x8b2   : > { %2575 = vst [vmem:[%s2559_s22 + $0x8] sm:$0xff] (%p3263_p5), %v2574_v8 }
 0x8b3   : > { %v2173_v25 = vadd.f32 %v2172_v59, %v2163_v6 }
 0x8b5   : > { %v2177_v56 = vadd.f32 %v2176_v35, %v2173_v25 }
 0x971   : > { %v2531_v57 = vpop.f32.mrf.mxu1 }
 0x972   : > { %v2536_v7 = vadd.f32 %v2531_v57, %v2177_v56  ;;  %2554 = sbr.rel (!%p3263_p5) target bundleno = 2431 (0x97f), region = 64 }
 0x973   : > { %v2533_v41 = vpop.f32.mrf.mxu1 }
 0x974   : > { %2546 = vst [vmem:[%s3592_s0 + $0x40] sm:$0x3f] %v2536_v7  ;;  %v2537_v58 = vadd.f32 %v2533_v41, %v2178_v39 }
 0x976   : > { %2547 = vst [vmem:[%s3592_s0 + $0x48] sm:$0x3f] %v2537_v58 }
 0x97b   : > { %v2588_v19 = vld [vmem:[%s3592_s0 + $0x40] sm:$0xff] }
 0x97c   : > { %2589 = vst [vmem:[%s2559_s22 + $0xc0] sm:$0xff] %v2588_v19 }
 0x97d   : > { %v2590_v28 = vld [vmem:[%s3592_s0 + $0x48] sm:$0xff] }
 0x97e   : > { %2591 = vst [vmem:[%s2559_s22 + $0xc8] sm:$0xff] %v2590_v28 }
 0x97f PF: > { %s20_s30 = sadd.s32 1, %s3168_s30   ;;  %s4217_s24 = smov %s3148_s25 }
 0x980   : > { %p17_p5 = scmp.ge.s32.totalorder %s20_s30, 8   ;;  %s4218_s25 = smov %s3289_s19 }
 0x981   : > { %s4219_s26 = smov %s3160_s28  ;;  %s4220_s27 = smov %s3164_s29 }
 0x982   : > { %s4221_s28 = smov %s4224_s9  ;;  %s4222_s29 = smov %s4228_s10 }
 0x983   :  { %19 = sbr.rel (!%p17_p5) target bundleno = 11 (0xb), region = 116 }
 0x988   :  { %2607 = vsyncpa [#allocation3], 1 }
 0x989   :  { %2609 = vsyncpa [#allocation3 + $0x1], 1 }
 0x98a   :  { %2610 = vsyncpa [#allocation7], 1 }
 0x98b   :  { %2611 = vsyncpa [#allocation4], 1 }
 0x98c   :  { %2613 = vsyncpa [#allocation4 + $0x1], 1 }

</bundles_post_ra>
